<compile_context>
chip_gen: v6e
topology: v6e:2x2x1
jax: 0.10.0
libtpu: 0.0.40
codegen_flags: <defaults>
</compile_context>

<pallas_src>
import functools

import jax
import jax.numpy as jnp
from jax.experimental import pallas as pl
from jax.experimental.pallas import tpu as pltpu


def _pad_channels(c):
    # Channels map to lanes: keep them a multiple of 128 (lane-dense VPU ops
    # and unmasked vector stores).
    return ((c + 127) // 128) * 128


def _pick_tiles(N, H, W, Cin_p, P_p, Cout_p, budget_bytes, tile_rows, batch_fold):
    """Pick (rows-per-image-tile, images-per-step) under a VMEM byte budget."""

    def est(rows, halo_rows):
        # double-buffered x/out blocks + the big in-kernel intermediates
        return (2 * (rows + halo_rows) * Cin_p * 2          # x blocks (bf16)
                + 2 * rows * Cout_p * 2                      # out blocks (bf16)
                + (rows + halo_rows) * P_p * 4               # h1 (f32)
                + rows * 9 * P_p * 2                         # tapmat (bf16)
                + rows * Cout_p * 4)                         # h3 (f32)

    if tile_rows is None:
        cands = [th for th in range(1, H + 1)
                 if H % th == 0 and ((th * W) % 8 == 0 or th == H)
                 and est(th * W, 2 * W) <= budget_bytes]
        tile_rows = max(cands) if cands else H
    if batch_fold is None:
        batch_fold = 1
        if tile_rows == H:           # whole images -> fold batch if it fits
            for b in range(N, 0, -1):
                if N % b == 0 and est(b * H * W, 0) <= budget_bytes:
                    batch_fold = b
                    break
    return tile_rows, batch_fold


def _bottleneck_kernel(H, W, TH, B_tile, tap_dtype, *refs):
    use_halo = (B_tile == 1)
    if use_halo:
        (x_ref, xt_ref, xb_ref,
         w1_ref, b1_ref, w2_ref, b2_ref, w3_ref, b3_ref, o_ref) = refs
    else:
        (x_ref,
         w1_ref, b1_ref, w2_ref, b2_ref, w3_ref, b3_ref, o_ref) = refs

    THW = TH * W
    M = B_tile * THW                          # output pixels this grid step
    Cin_p = x_ref.shape[-1]

    w1 = w1_ref[...]
    b1 = b1_ref[...]

    # ---- conv1 (1x1, BN scale folded into weights) + bias + ReLU ------------
    x_main = x_ref[...].reshape(M, Cin_p)                      # bf16
    h1 = jnp.maximum(
        jnp.dot(x_main, w1, preferred_element_type=jnp.float32) + b1, 0.0)

    flat = jax.lax.broadcasted_iota(jnp.int32, (M, 1), 0)
    gx = flat % W
    vx = {-1: gx >= 1, 0: None, 1: gx < W - 1}

    if use_halo:
        # conv1 on the +/-1 image-row halos (fetched from neighbouring rows of
        # the same HBM array).  At the image top/bottom the clamped halo row
        # is zeroed so the ky=+/-1 taps see conv2's zero padding -- this
        # replaces 8 per-tap y-masks with two tiny scalar-predicated selects.
        t = pl.program_id(1)

        def halo_row(ref, out_of_image):
            h = jnp.maximum(
                jnp.dot(ref[...].reshape(W, Cin_p), w1,
                        preferred_element_type=jnp.float32) + b1, 0.0)
            return jnp.where(out_of_image, 0.0, h)

        h_top = halo_row(xt_ref, t == 0)
        h_bot = halo_row(xb_ref, t == pl.num_programs(1) - 1)
        h1 = jnp.concatenate([h_top, h1, h_bot], axis=0)       # (M + 2W, P_p)
        base = W                  # haloed-row offset of output row 0
        vy = {-1: None, 0: None, 1: None}
    else:
        # Several whole images per grid step (batch folding): no halo rows, so
        # ky=+/-1 taps at each image's top/bottom rows are masked instead.
        base = 0
        gy = (flat // W) % H
        vy = {-1: gy >= 1, 0: None, 1: gy < H - 1}

    # ---- conv2 (3x3, stride=1, pad=1) as ONE MXU matmul ----------------------
    # Nine taps gathered with XLU sublane rolls (f32 rolls -- proven path),
    # then selects/concat in tap_dtype (bf16 on v6e/v7x, f32 on v5e).
    LEN = h1.shape[0]
    taps = []
    for ky in (-1, 0, 1):
        for kx in (-1, 0, 1):
            off = base + ky * W + kx
            rolled = pltpu.roll(h1, (-off) % LEN, axis=0) if off != 0 else h1
            tap = rolled[:M].astype(tap_dtype)
            valid = vy[ky]
            if vx[kx] is not None:
                valid = vx[kx] if valid is None else (valid & vx[kx])
            if valid is not None:
                tap = jnp.where(valid, tap, 0.0)
            taps.append(tap)
    tapmat = jnp.concatenate(taps, axis=-1).astype(jnp.bfloat16)  # (M, 9*P_p)

    h2 = jnp.dot(tapmat, w2_ref[...], preferred_element_type=jnp.float32)
    h2 = jnp.maximum(h2 + b2_ref[...], 0.0).astype(jnp.bfloat16)

    # ---- conv3 (1x1, BN scale folded) + bias ---------------------------------
    h3 = jnp.dot(h2, w3_ref[...], preferred_element_type=jnp.float32) + b3_ref[...]

    # ---- residual add (downsample None -> Cin == Cout) + ReLU ----------------
    # TODO(synk): residual uses the bf16-cast input, not a bit-exact f32 skip.
    out = jnp.maximum(h3 + x_main.astype(jnp.float32), 0.0)
    o_ref[...] = out.astype(o_ref.dtype).reshape(o_ref.shape)


def prepare_bottleneck_params(params, eps=1e-5):
    """Fold BN into the conv weights, pad channels to 128 and cast matmul
    weights to bf16.  Call ONCE per parameter set and reuse across forwards."""
    P, Cin = params["w1"].shape[:2]
    Cout = 4 * P
    assert params["w2"].shape == (P, P, 3, 3), "conv2 must be 3x3 / stride 1"
    assert params["w3"].shape[:2] == (Cout, P)
    Cin_p, P_p, Cout_p = _pad_channels(Cin), _pad_channels(P), _pad_channels(Cout)

    def fold_bn(bn):
        gamma, beta, mean, var = bn
        s = gamma / jnp.sqrt(var + eps)
        return s, beta - mean * s

    s1, b1 = fold_bn(params["bn1"])
    s2, b2 = fold_bn(params["bn2"])
    s3, b3 = fold_bn(params["bn3"])

    def pad2(a, r, c):
        return jnp.pad(a, ((0, r - a.shape[0]), (0, c - a.shape[1])))

    w1 = pad2(params["w1"][:, :, 0, 0].T * s1[None, :], Cin_p, P_p)
    w2 = jnp.transpose(params["w2"], (2, 3, 1, 0)) * s2[None, None, None, :]
    w2 = jnp.pad(w2.reshape(9, P, P), ((0, 0), (0, P_p - P), (0, P_p - P)))
    w3 = pad2(params["w3"][:, :, 0, 0].T * s3[None, :], P_p, Cout_p)

    return {
        "w1": w1.astype(jnp.bfloat16),
        "b1": jnp.pad(b1, (0, P_p - P)).astype(jnp.float32)[None, :],
        "w2": w2.reshape(9 * P_p, P_p).astype(jnp.bfloat16),
        "b2": jnp.pad(b2, (0, P_p - P)).astype(jnp.float32)[None, :],
        "w3": w3.astype(jnp.bfloat16),
        "b3": jnp.pad(b3, (0, Cout_p - Cout)).astype(jnp.float32)[None, :],
        "cin": int(Cin), "cout": int(Cout),
    }


def bottleneck_pallas_nhwc(x_nhwc, prepared, *, tile_rows=None, batch_fold=None,
                           tap_dtype=jnp.bfloat16,
                           vmem_limit_bytes=48 * 1024 * 1024):
    """Fused Bottleneck forward, NHWC in / NHWC bf16 out (no transposes).

    tap_dtype: bf16 (default, v6e/v7x) keeps the tap selects/concat in bf16;
    pass jnp.float32 on v5e (no bf16 VPU).  tile_rows / batch_fold default to a
    VMEM-budget-driven choice (whole images + batch folding when they fit).
    """
    N, H, W, Cin = x_nhwc.shape
    assert Cin == prepared["cin"] == prepared["cout"], (
        "downsample is None -> residual add requires inplanes == 4*planes")
    Cin_p, P_p = prepared["w1"].shape
    Cout_p = prepared["w3"].shape[1]
    Cout = prepared["cout"]

    TH, B = _pick_tiles(N, H, W, Cin_p, P_p, Cout_p,
                        vmem_limit_bytes // 2, tile_rows, batch_fold)
    assert H % TH == 0 and N % B == 0 and (B == 1 or TH == H)
    T = H // TH
    THW = TH * W
    G = N // B

    x = x_nhwc.astype(jnp.bfloat16)
    if Cin != Cin_p:
        x = jnp.pad(x, ((0, 0), (0, 0), (0, 0), (0, Cin_p - Cin)))

    const = lambda s: pl.BlockSpec(s, lambda g, t, _s=s: (0,) * len(_s))
    weight_specs = [const((Cin_p, P_p)), const((1, P_p)),
                    const((9 * P_p, P_p)), const((1, P_p)),
                    const((P_p, Cout_p)), const((1, Cout_p))]
    if B == 1:
        # Main row tile plus two 1-row halo blocks of the SAME array; the
        # halo row index is computed (clamped) in the index_map, so no
        # host-side halo duplication and no extra HBM pass over x.
        x_specs = [
            pl.BlockSpec((1, TH, W, Cin_p), lambda g, t: (g, t, 0, 0)),
            pl.BlockSpec((1, 1, W, Cin_p),
                         lambda g, t: (g, jnp.maximum(t * TH - 1, 0), 0, 0)),
            pl.BlockSpec((1, 1, W, Cin_p),
                         lambda g, t: (g, jnp.minimum((t + 1) * TH, H - 1), 0, 0)),
        ]
        x_args = [x, x, x]
    else:
        x_specs = [pl.BlockSpec((B, H, W, Cin_p), lambda g, t: (g, 0, 0, 0))]
        x_args = [x]

    w_args = [prepared[k] for k in ("w1", "b1", "w2", "b2", "w3", "b3")]
    w_bytes = sum(int(a.size) * a.dtype.itemsize for a in w_args)
    cost = pl.CostEstimate(
        flops=2 * N * H * W * (Cin_p * P_p + 9 * P_p * P_p + P_p * Cout_p),
        transcendentals=0,
        bytes_accessed=int(x.size) * 2 + N * H * W * Cout_p * 2 + w_bytes)

    out = pl.pallas_call(
        functools.partial(_bottleneck_kernel, H, W, TH, B, tap_dtype),
        out_shape=jax.ShapeDtypeStruct((N, H * W, Cout_p), jnp.bfloat16),
        grid=(G, T),
        in_specs=x_specs + weight_specs,
        out_specs=pl.BlockSpec((B, THW, Cout_p), lambda g, t: (g, t, 0)),
        compiler_params=pltpu.CompilerParams(
            dimension_semantics=("parallel", "parallel"),
            vmem_limit_bytes=vmem_limit_bytes),
        cost_estimate=cost,
    )(*x_args, *w_args)

    out = out.reshape(N, H, W, Cout_p)
    if Cout_p != Cout:
        out = out[..., :Cout]
    return out


def bottleneck_pallas(x_nchw, params, *, prepared=None, eps=1e-5, **kwargs):
    """PyTorch-parity wrapper: NCHW f32 in / NCHW f32 out."""
    if prepared is None:
        prepared = prepare_bottleneck_params(params, eps)
    x = jnp.transpose(x_nchw, (0, 2, 3, 1))
    out = bottleneck_pallas_nhwc(x, prepared, **kwargs)
    return jnp.transpose(out, (0, 3, 1, 2)).astype(x_nchw.dtype)


def bottleneck_ref(x, params, eps=1e-5):
    """Pure-JAX f32 reference (NCHW), mirrors the PyTorch forward (eval BN)."""
    def conv(a, w, pad=0):
        return jax.lax.conv_general_dilated(
            a, w, (1, 1), [(pad, pad), (pad, pad)],
            dimension_numbers=("NCHW", "OIHW", "NCHW"))

    def bn(a, p):
        gamma, beta, mean, var = p
        s = gamma / jnp.sqrt(var + eps)
        b = beta - mean * s
        return a * s[None, :, None, None] + b[None, :, None, None]

    relu = jax.nn.relu
    out = relu(bn(conv(x, params["w1"]), params["bn1"]))
    out = relu(bn(conv(out, params["w2"], pad=1), params["bn2"]))
    out = bn(conv(out, params["w3"]), params["bn3"])
    return relu(out + x)


if __name__ == "__main__":
    key = jax.random.PRNGKey(0)
    N, planes, H, W = 2, 4, 16, 16
    inplanes = planes * 4   # residual add requires inplanes == planes * expansion

    keys = jax.random.split(key, 16)

    def kaiming(k, shape):  # OIHW
        fan_in = shape[1] * shape[2] * shape[3]
        return jax.random.normal(k, shape, jnp.float32) * jnp.sqrt(2.0 / fan_in)

    def bn_params(k, c):
        k0, k1, k2, k3 = jax.random.split(k, 4)
        gamma = jax.random.uniform(k0, (c,), jnp.float32, 0.5, 1.5)
        beta = 0.1 * jax.random.normal(k1, (c,), jnp.float32)
        mean = 0.1 * jax.random.normal(k2, (c,), jnp.float32)
        var = jax.random.uniform(k3, (c,), jnp.float32, 0.5, 1.5)
        return (gamma, beta, mean, var)

    params = {
        "w1": kaiming(keys[0], (planes, inplanes, 1, 1)),
        "w2": kaiming(keys[1], (planes, planes, 3, 3)),
        "w3": kaiming(keys[2], (planes * 4, planes, 1, 1)),
        "bn1": bn_params(keys[3], planes),
        "bn2": bn_params(keys[4], planes),
        "bn3": bn_params(keys[5], planes * 4),
    }

    x = jax.random.normal(keys[15], (N, inplanes, H, W), jnp.float32)

    prepared = prepare_bottleneck_params(params)   # hoisted weight prep
    ref = jax.block_until_ready(bottleneck_ref(x, params))

    def check(out, name):
        assert out.shape == ref.shape == (N, inplanes, H, W)
        # Tolerance accounts for bf16 MXU inputs / bf16 output (f32 accum);
        # a structural bug (wrong tap/halo/mask) would give O(1) errors.
        if not jnp.allclose(out, ref, atol=1e-1, rtol=5e-2):
            raise AssertionError(
                f"{name}: max abs diff = {float(jnp.max(jnp.abs(out - ref)))}")

    # 1) Row-tiled halo path (tile_rows=8 -> 2 row tiles per image).
    out1 = jax.block_until_ready(
        bottleneck_pallas(x, params, prepared=prepared, tile_rows=8))
    check(out1, "halo path")

    # 2) Whole-image + batch-folding path (2 images per grid step).
    out2 = jax.block_until_ready(
        bottleneck_pallas(x, params, prepared=prepared, batch_fold=2))
    check(out2, "batch-fold path")

    print("KERNEL_OK")
</pallas_src>

<mosaic_0001>
module attributes {stable_mosaic.version = 11 : i64} {
  func.func @_bottleneck_kernel(%arg0: i32, %arg1: i32, %arg2: memref<1x8x16x128xbf16, #tpu.memory_space<vmem>>, %arg3: memref<1x1x16x128xbf16, #tpu.memory_space<vmem>>, %arg4: memref<1x1x16x128xbf16, #tpu.memory_space<vmem>>, %arg5: memref<128x128xbf16, #tpu.memory_space<vmem>>, %arg6: memref<1x128xf32, #tpu.memory_space<vmem>>, %arg7: memref<1152x128xbf16, #tpu.memory_space<vmem>>, %arg8: memref<1x128xf32, #tpu.memory_space<vmem>>, %arg9: memref<128x128xbf16, #tpu.memory_space<vmem>>, %arg10: memref<1x128xf32, #tpu.memory_space<vmem>>, %arg11: memref<1x128x128xbf16, #tpu.memory_space<vmem>>) attributes {dimension_semantics = [#tpu.dimension_semantics<parallel>, #tpu.dimension_semantics<parallel>], iteration_bounds = array<i64: 2, 2>, scalar_prefetch = 0 : i64, scratch_operands = 0 : i64, tpu.core_type = #tpu.core_type<tc>, window_params = [{transform_indices = @transform_0, window_bounds = array<i64: 1, 8, 16, 128>}, {transform_indices = @transform_1, window_bounds = array<i64: 1, 1, 16, 128>}, {transform_indices = @transform_2, window_bounds = array<i64: 1, 1, 16, 128>}, {pipeline_mode = #tpu.pipeline_mode<synchronous>, transform_indices = @transform_3, window_bounds = array<i64: 128, 128>}, {pipeline_mode = #tpu.pipeline_mode<synchronous>, transform_indices = @transform_4, window_bounds = array<i64: 1, 128>}, {pipeline_mode = #tpu.pipeline_mode<synchronous>, transform_indices = @transform_5, window_bounds = array<i64: 1152, 128>}, {pipeline_mode = #tpu.pipeline_mode<synchronous>, transform_indices = @transform_6, window_bounds = array<i64: 1, 128>}, {pipeline_mode = #tpu.pipeline_mode<synchronous>, transform_indices = @transform_7, window_bounds = array<i64: 128, 128>}, {pipeline_mode = #tpu.pipeline_mode<synchronous>, transform_indices = @transform_8, window_bounds = array<i64: 1, 128>}, {transform_indices = @transform_9, window_bounds = array<i64: 1, 128, 128>}]} {
    %c0 = arith.constant 0 : index
    %c0_0 = arith.constant 0 : index
    %0 = vector.load %arg5[%c0, %c0_0] : memref<128x128xbf16, #tpu.memory_space<vmem>>, vector<128x128xbf16>
    %c0_1 = arith.constant 0 : index
    %c0_2 = arith.constant 0 : index
    %1 = vector.load %arg6[%c0_1, %c0_2] : memref<1x128xf32, #tpu.memory_space<vmem>>, vector<1x128xf32>
    %c0_3 = arith.constant 0 : index
    %c0_4 = arith.constant 0 : index
    %c0_5 = arith.constant 0 : index
    %c0_6 = arith.constant 0 : index
    %2 = vector.load %arg2[%c0_3, %c0_4, %c0_5, %c0_6] : memref<1x8x16x128xbf16, #tpu.memory_space<vmem>>, vector<1x8x16x128xbf16>
    %3 = vector.shape_cast %2 : vector<1x8x16x128xbf16> to vector<128x128xbf16>
    %cst = arith.constant dense<0.000000e+00> : vector<128x128xf32>
    %4 = tpu.matmul %3, %0, %cst {dimension_numbers = #tpu.dot_dimension_numbers<[1], [0], [0], [1], [0, 0, 1, 1], [], []>} : vector<128x128xbf16>, vector<128x128xbf16>, vector<128x128xf32> -> vector<128x128xf32>
    %5 = vector.broadcast %1 : vector<1x128xf32> to vector<128x128xf32>
    %6 = arith.addf %4, %5 : vector<128x128xf32>
    %cst_7 = arith.constant 0.000000e+00 : f32
    %7 = vector.broadcast %cst_7 : f32 to vector<128x128xf32>
    %8 = arith.maximumf %6, %7 : vector<128x128xf32>
    %9 = tpu.iota {dimensions = array<i32: 0>} : vector<128x1xi32>
    %c16_i32 = arith.constant 16 : i32
    %c0_i32 = arith.constant 0 : i32
    %10 = arith.cmpi eq, %c16_i32, %c0_i32 : i32
    %c1_i32 = arith.constant 1 : i32
    %11 = arith.select %10, %c1_i32, %c16_i32 : i32
    %12 = vector.broadcast %11 : i32 to vector<128x1xi32>
    %13 = arith.remsi %9, %12 : vector<128x1xi32>
    %c0_i32_8 = arith.constant 0 : i32
    %14 = vector.broadcast %c0_i32_8 : i32 to vector<128x1xi32>
    %15 = arith.cmpi ne, %13, %14 : vector<128x1xi32>
    %c0_i32_9 = arith.constant 0 : i32
    %16 = vector.broadcast %c0_i32_9 : i32 to vector<128x1xi32>
    %17 = arith.cmpi slt, %13, %16 : vector<128x1xi32>
    %c0_i32_10 = arith.constant 0 : i32
    %18 = arith.cmpi slt, %11, %c0_i32_10 : i32
    %19 = vector.broadcast %18 : i1 to vector<128x1xi1>
    %20 = vector.broadcast %19 : vector<128x1xi1> to vector<128x1xi1>
    %21 = arith.xori %17, %20 : vector<128x1xi1>
    %22 = arith.andi %21, %15 : vector<128x1xi1>
    %23 = vector.broadcast %11 : i32 to vector<128x1xi32>
    %24 = arith.addi %13, %23 : vector<128x1xi32>
    %25 = arith.select %22, %24, %13 : vector<128x1xi1>, vector<128x1xi32>
    %c1_i32_11 = arith.constant 1 : i32
    %26 = vector.broadcast %c1_i32_11 : i32 to vector<128x1xi32>
    %27 = arith.cmpi sge, %25, %26 : vector<128x1xi32>
    %c15_i32 = arith.constant 15 : i32
    %28 = vector.broadcast %c15_i32 : i32 to vector<128x1xi32>
    %29 = arith.cmpi slt, %25, %28 : vector<128x1xi32>
    %c0_i32_12 = arith.constant 0 : i32
    %30 = arith.cmpi eq, %arg1, %c0_i32_12 : i32
    %c0_13 = arith.constant 0 : index
    %c0_14 = arith.constant 0 : index
    %c0_15 = arith.constant 0 : index
    %c0_16 = arith.constant 0 : index
    %31 = vector.load %arg3[%c0_13, %c0_14, %c0_15, %c0_16] : memref<1x1x16x128xbf16, #tpu.memory_space<vmem>>, vector<1x1x16x128xbf16>
    %32 = vector.shape_cast %31 : vector<1x1x16x128xbf16> to vector<16x128xbf16>
    %cst_17 = arith.constant dense<0.000000e+00> : vector<16x128xf32>
    %33 = tpu.matmul %32, %0, %cst_17 {dimension_numbers = #tpu.dot_dimension_numbers<[1], [0], [0], [1], [0, 0, 1, 1], [], []>} : vector<16x128xbf16>, vector<128x128xbf16>, vector<16x128xf32> -> vector<16x128xf32>
    %34 = vector.broadcast %1 : vector<1x128xf32> to vector<16x128xf32>
    %35 = arith.addf %33, %34 : vector<16x128xf32>
    %cst_18 = arith.constant 0.000000e+00 : f32
    %36 = vector.broadcast %cst_18 : f32 to vector<16x128xf32>
    %37 = arith.maximumf %35, %36 : vector<16x128xf32>
    %cst_19 = arith.constant 0.000000e+00 : f32
    %38 = vector.broadcast %cst_19 : f32 to vector<16x128xf32>
    %39 = arith.select %30, %38, %37 : vector<16x128xf32>
    %c1_i32_20 = arith.constant 1 : i32
    %40 = arith.cmpi eq, %arg1, %c1_i32_20 : i32
    %c0_21 = arith.constant 0 : index
    %c0_22 = arith.constant 0 : index
    %c0_23 = arith.constant 0 : index
    %c0_24 = arith.constant 0 : index
    %41 = vector.load %arg4[%c0_21, %c0_22, %c0_23, %c0_24] : memref<1x1x16x128xbf16, #tpu.memory_space<vmem>>, vector<1x1x16x128xbf16>
    %42 = vector.shape_cast %41 : vector<1x1x16x128xbf16> to vector<16x128xbf16>
    %cst_25 = arith.constant dense<0.000000e+00> : vector<16x128xf32>
    %43 = tpu.matmul %42, %0, %cst_25 {dimension_numbers = #tpu.dot_dimension_numbers<[1], [0], [0], [1], [0, 0, 1, 1], [], []>} : vector<16x128xbf16>, vector<128x128xbf16>, vector<16x128xf32> -> vector<16x128xf32>
    %44 = vector.broadcast %1 : vector<1x128xf32> to vector<16x128xf32>
    %45 = arith.addf %43, %44 : vector<16x128xf32>
    %cst_26 = arith.constant 0.000000e+00 : f32
    %46 = vector.broadcast %cst_26 : f32 to vector<16x128xf32>
    %47 = arith.maximumf %45, %46 : vector<16x128xf32>
    %cst_27 = arith.constant 0.000000e+00 : f32
    %48 = vector.broadcast %cst_27 : f32 to vector<16x128xf32>
    %49 = arith.select %40, %48, %47 : vector<16x128xf32>
    %50 = tpu.concatenate %39, %8, %49 in 0 : vector<16x128xf32>, vector<128x128xf32>, vector<16x128xf32> -> vector<160x128xf32>
    %c1_i32_28 = arith.constant 1 : i32
    %51 = tpu.dynamic_rotate %50 by %c1_i32_28 dim 0 : vector<160x128xf32>, i32 -> vector<160x128xf32>
    %52 = vector.extract_strided_slice %51 {offsets = [0, 0], sizes = [128, 128], strides = [1, 1]} : vector<160x128xf32> to vector<128x128xf32>
    %53 = arith.truncf %52 : vector<128x128xf32> to vector<128x128xbf16>
    %cst_29 = arith.constant 0.000000e+00 : f32
    %54 = arith.truncf %cst_29 : f32 to bf16
    %55 = vector.shape_cast %27 : vector<128x1xi1> to vector<128x1xi1>
    %56 = vector.broadcast %55 : vector<128x1xi1> to vector<128x128xi1>
    %57 = vector.broadcast %54 : bf16 to vector<128x128xbf16>
    %58 = arith.select %56, %53, %57 : vector<128x128xi1>, vector<128x128xbf16>
    %59 = vector.extract_strided_slice %50 {offsets = [0, 0], sizes = [128, 128], strides = [1, 1]} : vector<160x128xf32> to vector<128x128xf32>
    %60 = arith.truncf %59 : vector<128x128xf32> to vector<128x128xbf16>
    %c159_i32 = arith.constant 159 : i32
    %61 = tpu.dynamic_rotate %50 by %c159_i32 dim 0 : vector<160x128xf32>, i32 -> vector<160x128xf32>
    %62 = vector.extract_strided_slice %61 {offsets = [0, 0], sizes = [128, 128], strides = [1, 1]} : vector<160x128xf32> to vector<128x128xf32>
    %63 = arith.truncf %62 : vector<128x128xf32> to vector<128x128xbf16>
    %cst_30 = arith.constant 0.000000e+00 : f32
    %64 = arith.truncf %cst_30 : f32 to bf16
    %65 = vector.shape_cast %29 : vector<128x1xi1> to vector<128x1xi1>
    %66 = vector.broadcast %65 : vector<128x1xi1> to vector<128x128xi1>
    %67 = vector.broadcast %64 : bf16 to vector<128x128xbf16>
    %68 = arith.select %66, %63, %67 : vector<128x128xi1>, vector<128x128xbf16>
    %c145_i32 = arith.constant 145 : i32
    %69 = tpu.dynamic_rotate %50 by %c145_i32 dim 0 : vector<160x128xf32>, i32 -> vector<160x128xf32>
    %70 = vector.extract_strided_slice %69 {offsets = [0, 0], sizes = [128, 128], strides = [1, 1]} : vector<160x128xf32> to vector<128x128xf32>
    %71 = arith.truncf %70 : vector<128x128xf32> to vector<128x128xbf16>
    %cst_31 = arith.constant 0.000000e+00 : f32
    %72 = arith.truncf %cst_31 : f32 to bf16
    %73 = vector.shape_cast %27 : vector<128x1xi1> to vector<128x1xi1>
    %74 = vector.broadcast %73 : vector<128x1xi1> to vector<128x128xi1>
    %75 = vector.broadcast %72 : bf16 to vector<128x128xbf16>
    %76 = arith.select %74, %71, %75 : vector<128x128xi1>, vector<128x128xbf16>
    %c144_i32 = arith.constant 144 : i32
    %77 = tpu.dynamic_rotate %50 by %c144_i32 dim 0 : vector<160x128xf32>, i32 -> vector<160x128xf32>
    %78 = vector.extract_strided_slice %77 {offsets = [0, 0], sizes = [128, 128], strides = [1, 1]} : vector<160x128xf32> to vector<128x128xf32>
    %79 = arith.truncf %78 : vector<128x128xf32> to vector<128x128xbf16>
    %c143_i32 = arith.constant 143 : i32
    %80 = tpu.dynamic_rotate %50 by %c143_i32 dim 0 : vector<160x128xf32>, i32 -> vector<160x128xf32>
    %81 = vector.extract_strided_slice %80 {offsets = [0, 0], sizes = [128, 128], strides = [1, 1]} : vector<160x128xf32> to vector<128x128xf32>
    %82 = arith.truncf %81 : vector<128x128xf32> to vector<128x128xbf16>
    %cst_32 = arith.constant 0.000000e+00 : f32
    %83 = arith.truncf %cst_32 : f32 to bf16
    %84 = vector.shape_cast %29 : vector<128x1xi1> to vector<128x1xi1>
    %85 = vector.broadcast %84 : vector<128x1xi1> to vector<128x128xi1>
    %86 = vector.broadcast %83 : bf16 to vector<128x128xbf16>
    %87 = arith.select %85, %82, %86 : vector<128x128xi1>, vector<128x128xbf16>
    %c129_i32 = arith.constant 129 : i32
    %88 = tpu.dynamic_rotate %50 by %c129_i32 dim 0 : vector<160x128xf32>, i32 -> vector<160x128xf32>
    %89 = vector.extract_strided_slice %88 {offsets = [0, 0], sizes = [128, 128], strides = [1, 1]} : vector<160x128xf32> to vector<128x128xf32>
    %90 = arith.truncf %89 : vector<128x128xf32> to vector<128x128xbf16>
    %cst_33 = arith.constant 0.000000e+00 : f32
    %91 = arith.truncf %cst_33 : f32 to bf16
    %92 = vector.shape_cast %27 : vector<128x1xi1> to vector<128x1xi1>
    %93 = vector.broadcast %92 : vector<128x1xi1> to vector<128x128xi1>
    %94 = vector.broadcast %91 : bf16 to vector<128x128xbf16>
    %95 = arith.select %93, %90, %94 : vector<128x128xi1>, vector<128x128xbf16>
    %c128_i32 = arith.constant 128 : i32
    %96 = tpu.dynamic_rotate %50 by %c128_i32 dim 0 : vector<160x128xf32>, i32 -> vector<160x128xf32>
    %97 = vector.extract_strided_slice %96 {offsets = [0, 0], sizes = [128, 128], strides = [1, 1]} : vector<160x128xf32> to vector<128x128xf32>
    %98 = arith.truncf %97 : vector<128x128xf32> to vector<128x128xbf16>
    %c127_i32 = arith.constant 127 : i32
    %99 = tpu.dynamic_rotate %50 by %c127_i32 dim 0 : vector<160x128xf32>, i32 -> vector<160x128xf32>
    %100 = vector.extract_strided_slice %99 {offsets = [0, 0], sizes = [128, 128], strides = [1, 1]} : vector<160x128xf32> to vector<128x128xf32>
    %101 = arith.truncf %100 : vector<128x128xf32> to vector<128x128xbf16>
    %cst_34 = arith.constant 0.000000e+00 : f32
    %102 = arith.truncf %cst_34 : f32 to bf16
    %103 = vector.shape_cast %29 : vector<128x1xi1> to vector<128x1xi1>
    %104 = vector.broadcast %103 : vector<128x1xi1> to vector<128x128xi1>
    %105 = vector.broadcast %102 : bf16 to vector<128x128xbf16>
    %106 = arith.select %104, %101, %105 : vector<128x128xi1>, vector<128x128xbf16>
    %107 = tpu.concatenate %58, %60, %68, %76, %79, %87, %95, %98, %106 in 1 : vector<128x128xbf16>, vector<128x128xbf16>, vector<128x128xbf16>, vector<128x128xbf16>, vector<128x128xbf16>, vector<128x128xbf16>, vector<128x128xbf16>, vector<128x128xbf16>, vector<128x128xbf16> -> vector<128x1152xbf16>
    %c0_35 = arith.constant 0 : index
    %c0_36 = arith.constant 0 : index
    %108 = vector.load %arg7[%c0_35, %c0_36] : memref<1152x128xbf16, #tpu.memory_space<vmem>>, vector<1152x128xbf16>
    %cst_37 = arith.constant dense<0.000000e+00> : vector<128x128xf32>
    %109 = tpu.matmul %107, %108, %cst_37 {dimension_numbers = #tpu.dot_dimension_numbers<[1], [0], [0], [1], [0, 0, 1, 1], [], []>} : vector<128x1152xbf16>, vector<1152x128xbf16>, vector<128x128xf32> -> vector<128x128xf32>
    %c0_38 = arith.constant 0 : index
    %c0_39 = arith.constant 0 : index
    %110 = vector.load %arg8[%c0_38, %c0_39] : memref<1x128xf32, #tpu.memory_space<vmem>>, vector<1x128xf32>
    %111 = vector.broadcast %110 : vector<1x128xf32> to vector<128x128xf32>
    %112 = arith.addf %109, %111 : vector<128x128xf32>
    %cst_40 = arith.constant 0.000000e+00 : f32
    %113 = vector.broadcast %cst_40 : f32 to vector<128x128xf32>
    %114 = arith.maximumf %112, %113 : vector<128x128xf32>
    %115 = arith.truncf %114 : vector<128x128xf32> to vector<128x128xbf16>
    %c0_41 = arith.constant 0 : index
    %c0_42 = arith.constant 0 : index
    %116 = vector.load %arg9[%c0_41, %c0_42] : memref<128x128xbf16, #tpu.memory_space<vmem>>, vector<128x128xbf16>
    %cst_43 = arith.constant dense<0.000000e+00> : vector<128x128xf32>
    %117 = tpu.matmul %115, %116, %cst_43 {dimension_numbers = #tpu.dot_dimension_numbers<[1], [0], [0], [1], [0, 0, 1, 1], [], []>} : vector<128x128xbf16>, vector<128x128xbf16>, vector<128x128xf32> -> vector<128x128xf32>
    %c0_44 = arith.constant 0 : index
    %c0_45 = arith.constant 0 : index
    %118 = vector.load %arg10[%c0_44, %c0_45] : memref<1x128xf32, #tpu.memory_space<vmem>>, vector<1x128xf32>
    %119 = vector.broadcast %118 : vector<1x128xf32> to vector<128x128xf32>
    %120 = arith.addf %117, %119 : vector<128x128xf32>
    %121 = arith.extf %3 : vector<128x128xbf16> to vector<128x128xf32>
    %122 = arith.addf %120, %121 : vector<128x128xf32>
    %cst_46 = arith.constant 0.000000e+00 : f32
    %123 = vector.broadcast %cst_46 : f32 to vector<128x128xf32>
    %124 = arith.maximumf %122, %123 : vector<128x128xf32>
    %125 = arith.truncf %124 : vector<128x128xf32> to vector<128x128xbf16>
    %126 = vector.shape_cast %125 : vector<128x128xbf16> to vector<1x128x128xbf16>
    %c0_47 = arith.constant 0 : index
    %c0_48 = arith.constant 0 : index
    %c0_49 = arith.constant 0 : index
    %127 = vector.load %arg11[%c0_47, %c0_48, %c0_49] : memref<1x128x128xbf16, #tpu.memory_space<vmem>>, vector<1x128x128xbf16>
    tpu.vector_store %arg11[%c0_47, %c0_48, %c0_49], %126 {strides = array<i32>} : memref<1x128x128xbf16, #tpu.memory_space<vmem>>, vector<1x128x128xbf16>,
    return
  }
  func.func @transform_0(%arg0: i32, %arg1: i32) -> (i32, i32, i32, i32) {
    %c0_i32 = arith.constant 0 : i32
    %c0_i32_0 = arith.constant 0 : i32
    %c0_i32_1 = arith.constant 0 : i32
    return %arg0, %arg1, %c0_i32, %c0_i32_0 : i32, i32, i32, i32
  }
  func.func @transform_1(%arg0: i32, %arg1: i32) -> (i32, i32, i32, i32) {
    %c8_i32 = arith.constant 8 : i32
    %0 = arith.muli %arg1, %c8_i32 : i32
    %c1_i32 = arith.constant 1 : i32
    %1 = arith.subi %0, %c1_i32 : i32
    %c0_i32 = arith.constant 0 : i32
    %2 = arith.maxsi %1, %c0_i32 : i32
    %c0_i32_0 = arith.constant 0 : i32
    %c0_i32_1 = arith.constant 0 : i32
    %c0_i32_2 = arith.constant 0 : i32
    return %arg0, %2, %c0_i32_0, %c0_i32_1 : i32, i32, i32, i32
  }
  func.func @transform_2(%arg0: i32, %arg1: i32) -> (i32, i32, i32, i32) {
    %c1_i32 = arith.constant 1 : i32
    %0 = arith.addi %arg1, %c1_i32 : i32
    %c8_i32 = arith.constant 8 : i32
    %1 = arith.muli %0, %c8_i32 : i32
    %c15_i32 = arith.constant 15 : i32
    %2 = arith.minsi %1, %c15_i32 : i32
    %c0_i32 = arith.constant 0 : i32
    %c0_i32_0 = arith.constant 0 : i32
    %c0_i32_1 = arith.constant 0 : i32
    return %arg0, %2, %c0_i32, %c0_i32_0 : i32, i32, i32, i32
  }
  func.func @transform_3(%arg0: i32, %arg1: i32) -> (i32, i32) {
    %c0_i32 = arith.constant 0 : i32
    %c0_i32_0 = arith.constant 0 : i32
    %c0_i32_1 = arith.constant 0 : i32
    return %c0_i32, %c0_i32_0 : i32, i32
  }
  func.func @transform_4(%arg0: i32, %arg1: i32) -> (i32, i32) {
    %c0_i32 = arith.constant 0 : i32
    %c0_i32_0 = arith.constant 0 : i32
    %c0_i32_1 = arith.constant 0 : i32
    return %c0_i32, %c0_i32_0 : i32, i32
  }
  func.func @transform_5(%arg0: i32, %arg1: i32) -> (i32, i32) {
    %c0_i32 = arith.constant 0 : i32
    %c0_i32_0 = arith.constant 0 : i32
    %c0_i32_1 = arith.constant 0 : i32
    return %c0_i32, %c0_i32_0 : i32, i32
  }
  func.func @transform_6(%arg0: i32, %arg1: i32) -> (i32, i32) {
    %c0_i32 = arith.constant 0 : i32
    %c0_i32_0 = arith.constant 0 : i32
    %c0_i32_1 = arith.constant 0 : i32
    return %c0_i32, %c0_i32_0 : i32, i32
  }
  func.func @transform_7(%arg0: i32, %arg1: i32) -> (i32, i32) {
    %c0_i32 = arith.constant 0 : i32
    %c0_i32_0 = arith.constant 0 : i32
    %c0_i32_1 = arith.constant 0 : i32
    return %c0_i32, %c0_i32_0 : i32, i32
  }
  func.func @transform_8(%arg0: i32, %arg1: i32) -> (i32, i32) {
    %c0_i32 = arith.constant 0 : i32
    %c0_i32_0 = arith.constant 0 : i32
    %c0_i32_1 = arith.constant 0 : i32
    return %c0_i32, %c0_i32_0 : i32, i32
  }
  func.func @transform_9(%arg0: i32, %arg1: i32) -> (i32, i32, i32) {
    %c0_i32 = arith.constant 0 : i32
    %c0_i32_0 = arith.constant 0 : i32
    return %arg0, %arg1, %c0_i32 : i32, i32, i32
  }
}

</mosaic_0001>

<bundles_post_ra>
// kernel: tpu_custom_call.1
= control target key start
LH: loop header
LB: loop body
LE: loop exit
PB: predicated region body
PF: predicated region fallthrough
CT: control target
= control target key end

     0   :  { %s6032_s0 = inlined_call_operand.hbm [shape: bf16[2,16,16,128], index: 0, kind: input, shape index: {}]   ;;  %s6033_s1 = inlined_call_operand.hbm [shape: bf16[2,16,16,128], index: 1, kind: input, shape index: {}]   ;;  %s6034_s2 = inlined_call_operand.hbm [shape: bf16[2,16,16,128], index: 2, kind: input, shape index: {}]   ;;  %s6035_s3 = inlined_call_operand.hbm [shape: bf16[128,128], index: 3, kind: input, shape index: {}]   ;;  %s6036_s4 = inlined_call_operand.vmem [shape: f32[1,128], index: 4, kind: input, shape index: {}]   ;;  %s6037_s5 = inlined_call_operand.hbm [shape: bf16[1152,128], index: 5, kind: input, shape index: {}]   ;;  %s6038_s6 = inlined_call_operand.vmem [shape: f32[1,128], index: 6, kind: input, shape index: {}]   ;;  %s6039_s7 = inlined_call_operand.hbm [shape: bf16[128,128], index: 7, kind: input, shape index: {}]   ;;  %s6040_s8 = inlined_call_operand.vmem [shape: f32[1,128], index: 8, kind: input, shape index: {}]   ;;  %s6041_s9 = inlined_call_operand.hbm [shape: bf16[2,256,128], index: 9, kind: output, shape index: {}]  }
   0x1   :  { %6091 = sst [smem:[#allocation55_spill]] %s6032_s0 }
   0x2   :  { %6092 = sst [smem:[#allocation56_spill]] %s6033_s1 }
   0x3   :  { %6093 = sst [smem:[#allocation57_spill]] %s6034_s2 }
   0x4   :  { %6094 = sst [smem:[#allocation58_spill]] %s6035_s3 }
   0x5   :  { %6095 = sst [smem:[#allocation59_spill]] %s6036_s4 }
   0x6   :  { %6096 = sst [smem:[#allocation60_spill]] %s6037_s5 }
   0x7   :  { %6097 = sst [smem:[#allocation61_spill]] %s6038_s6 }
   0x8   :  { %6098 = sst [smem:[#allocation62_spill]] %s6039_s7 }
   0x9   :  { %6099 = sst [smem:[#allocation63_spill]] %s6040_s8 }
   0xa   :  { %6100 = sst [smem:[#allocation64_spill]] %s6041_s9 }
   0xb   :  { %14 = vsyncpa [#allocation3], 0 }
   0xc   :  { %16 = vsyncpa [#allocation3 + $0x1], 0 }
   0xd   :  { %17 = vsyncpa [#allocation6], 0 }
   0xe   :  { %19 = vsyncpa [#allocation6 + $0x1], 0 }
   0xf   :  { %20 = vsyncpa [#allocation9], 0 }
  0x10   :  { %21 = vsyncpa [#allocation12], 0 }
  0x11   :  { %22 = vsyncpa [#allocation4], 0 }
  0x12   :  { %24 = vsyncpa [#allocation4 + $0x1], 0  ;;  %s4519_s30 = smov 0   ;;  %s4521_s10 = smov 0  }
  0x13   :  { %s4523_s11 = smov 0   ;;  %s4525_s12 = smov 0  }
  0x14   :  { %s4527_s13 = smov 0   ;;  %s4529_s14 = smov 0  }
  0x15   :  { %s4531_s15 = smov 0   ;;  %s4533_s16 = smov 0  }
  0x16   :  { %s4535_s17 = smov 0   ;;  %s4537_s18 = smov 0  }
  0x17   :  { %s4539_s19 = smov 0   ;;  %s4541_s20 = smov 0  }
  0x18   :  { %s4543_s21 = smov 0   ;;  %s4545_s22 = smov 0  }
  0x19 LB: > { %6101 = sst [smem:[#allocation20_spill]] %s4400_s30  ;;  %s4590_s23 = sadd.s32 4294967295, %s4452_s22   ;;  %s4452_s22 = sphi %s4545_s22, %s30_s22   ;;  %s4448_s21 = sphi %s4543_s21, %s6318_s21   ;;  %s4444_s20 = sphi %s4541_s20, %s6326_s20   ;;  %s4440_s19 = sphi %s4539_s19, %s6316_s19   ;;  %s4436_s18 = sphi %s4537_s18, %s6315_s18   ;;  %s4432_s17 = sphi %s4535_s17, %s6325_s17   ;;  %s4428_s16 = sphi %s4533_s16, %s6324_s16   ;;  %s4424_s15 = sphi %s4531_s15, %s6323_s15   ;;  %s4420_s14 = sphi %s4529_s14, %s6322_s14   ;;  %s4416_s13 = sphi %s4527_s13, %s6321_s13   ;;  %s4412_s12 = sphi %s4525_s12, %s6312_s12   ;;  %s4408_s11 = sphi %s4523_s11, %s6320_s11   ;;  %s4404_s10 = sphi %s4521_s10, %s6311_s10   ;;  %s4400_s30 = sphi %s4519_s30, %s6319_s30  }
  0x1a   : > { %6102 = sst [smem:[#allocation21_spill]] %s4404_s10  ;;  %p3071_p0 = scmp.ge.s32.totalorder %s4452_s22, 1 }
  0x1b   : > { %6103 = sst [smem:[#allocation22_spill]] %s4408_s11  ;;  %p6061_p1 = scmp.eq.s32.totalorder %s4590_s23, 0 }
  0x1c   : > { %6104 = sst [smem:[#allocation23_spill]] %s4416_s13  ;;  %p301_p3 = scmp.lt.s32.totalorder %s4452_s22, 5 }
  0x1d   : > { %6105 = sst [smem:[#allocation24_spill]] %s4436_s18  ;;  %s4454_s25 = smov [#allocation8]  }
  0x1e   : > { %6106 = sst [smem:[#allocation25_spill]] %s4440_s19  ;;  %p4596_p4 = pnand %p3071_p0, %p301_p3 }
  0x1f   : > { %6107 = sst [smem:[#allocation26_spill]] %s4444_s20  ;;  %s313_s26 = sshll.u32 %s4454_s25, 4  ;;  %s314_s26 = int_to_ptr.vmem [resolvable:$true] %s313_s26 }
  0x20   : > { %6108 = sst [smem:[#allocation27_spill]] %s4448_s21  ;;  %p3861_p5 = pneg %p4596_p4 }
  0x21   : > { %s6109_s24 = scalar_select %p4596_p4, 1, 0 }
  0x22   : > { %p4604_p6 = pnand %p3861_p5, %p6061_p1  ;;  %s4141_s28 = scalar_lea.vmem %s314_s26, 1024 }
  0x23   : > { %6110 = sst [smem:[#allocation28_spill]] %s6109_s24  ;;  %p4142_p8 = scmp.ne.s32.totalorder %s314_s26, %s4141_s28 }
  0x24   : > { %p4132_p7 = pneg %p4604_p6  ;;  %p4149_p11 = scmp.lt.s32.totalorder %s314_s26, %s314_s26 }
  0x25   : > { %p4150_p12 = scmp.lt.s32.totalorder %s4141_s28, %s4141_s28 }
  0x26   : > { %p4144_p9 = pnand %p4142_p8, %p4132_p7 }
  0x27   : > { %p4151_p13 = por %p4150_p12, %p4149_p11 }
  0x28   : > { %p4145_p10 = pneg %p4144_p9 }
  0x2a   : > { %p4152_p0 = pnand %p4151_p13, %p4145_p10 }
  0x2c   : > { %4155 = shalt.err (!%p4152_p0)
}
  0x2d   : > { %s6045_s29 = smov 64   ;;  %s6047_s25 = smov 4  }
  0x2e   : > { %s6112_s3 = sld [smem:[#allocation58_spill]]  ;;  %s39_s19 = sadd.s32 1, %s4444_s20 }
  0x2f   : > { %s42_s8 = sadd.s32 1, %s4448_s21  ;;  %p40_p3 = scmp.ge.s32.totalorder %s39_s19, 2 }
  0x30   : > { %p6062_p5 = scmp.eq.s32.totalorder %s4452_s22, 0  ;;  %s3065_s6 = sshll.u32 %s4444_s20, 3 }
  0x31   : > { %s87_s4 = sadd.s32 1, %s4420_s14  ;;  %s6328_s19 = smov (%p40_p3, %s39_s19), 0 }
  0x32   : > { %6113 = sst [smem:[#allocation29_spill]] %s6328_s19  ;;  %s6330_s8 = smov (!%p40_p3, %s42_s8), %s4448_s21 }
  0x33   : > { %s47_s18 = ssub.s32 %s4444_s20, %s6328_s19  ;;  %s3066_s24 = sadd.s32 4294967295, %s3065_s6 }
  0x34   : > { %3864 = dma.hbm_to_vmem [thread:$0]  (!%p4604_p6), %s6112_s3, 1024, %s314_s26, [#allocation9], %s6045_s29, %s6045_s29, %s6047_s25  }
  0x35   : > { %p44_p8 = scmp.ge.s32.totalorder %s6330_s8, 2  ;;  %p76_p9 = scmp.gt.s32.totalorder %s3066_s24, 0 }
  0x36   : > { %s3067_s9 = sshll.u32 %s6328_s19, 3  ;;  %p94_p10 = scmp.ne.s32.totalorder %s4420_s14, %s4416_s13 }
  0x37   : > { %s6332_s8 = smov (%p44_p8, %s6330_s8), 0  ;;  %s6334_s24 = smov (!%p76_p9, %s3066_s24), 0 }
  0x38   : > { %6114 = sst [smem:[#allocation30_spill]] %s6332_s8  ;;  %s4638_s26 = ssub.s32 %s4448_s21, %s6332_s8 }
  0x39   : > { %6115 = sst [smem:[#allocation31_spill]] %s4638_s26  ;;  %s3068_s28 = sadd.s32 4294967295, %s3067_s9 }
  0x3a   : > { %s4641_s29 = sor.u32 %s47_s18, %s4638_s26  ;;  %p80_p11 = scmp.gt.s32.totalorder %s3068_s28, 0 }
  0x3b   : > { %p49_p12 = scmp.eq.s32.totalorder %s4641_s29, 0  ;;  %p4646_p13 = por %p94_p10, %p6062_p5 }
  0x3c   : > { %s6336_s28 = smov (!%p80_p11, %s3068_s28), 0  ;;  %p100_p0 = scmp.ne.s32.totalorder %s4416_s13, %s4412_s12 }
  0x3d   : > { %s4652_s3 = sadd.s32 8, %s3065_s6  ;;  %s83_s8 = ssub.s32 %s6334_s24, %s6336_s28 }
  0x3e   : > { %6117 = sst [smem:[#allocation32_spill]] %s4652_s3  ;;  %s84_s18 = sor.u32 %s83_s8, %s4638_s26 }
  0x3f   : > { %p4658_p8 = por %p100_p0, %p6061_p1  ;;  %p85_p9 = scmp.eq.s32.totalorder %s84_s18, 0 }
  0x40   : > { %s4662_s2 = sadd.s32 8, %s3067_s9  ;;  %p6060_p11 = scmp.lt.s32.totalorder %s4452_s22, 4 }
  0x41   : > { %s6118_s19 = scalar_select %p4658_p8, 1, 0 }
  0x42   : > { %s4667_s12 = scalar_select %p85_p9, %s4420_s14, %s87_s4  }
  0x43   : > { %6119 = sst [smem:[#allocation33_spill]] %s6118_s19  ;;  %s4670_s6 = sshll.u32 %s4448_s21, 5 }
  0x44   : > { %6120 = sst [smem:[#allocation34_spill]] %s4667_s12  ;;  %s386_s28 = sand.u32 1, %s4452_s22  }
  0x45   : > { %s388_s8 = sand.u32 1, %s4420_s14   ;;  %s3084_s26 = sshll.u32 %s6334_s24, 1 }
  0x46   : > { %s3081_s13 = sshll.u32 %s388_s8, 3  ;;  %s400_s30 = sadd.s32 %s3084_s26, %s4670_s6 }
  0x47   : > { %s3086_s10 = sshll.u32 %s400_s30, 6  ;;  %s390_s19 = scalar_lea.vmem [#allocation5], %s3081_s13 }
  0x48   : > { %s403_s18 = sshll.u32 %s390_s19, 4  ;;  %s6121_s1 = sld [smem:[#allocation56_spill]]  ;;  %s404_s18 = int_to_ptr.vmem [resolvable:$true] %s403_s18 }
  0x49   : > { %p4682_p0 = pnand %p6060_p11, %p4646_p13  ;;  %s4457_s21 = smov [#allocation10]  }
  0x4a   : > { %s329_s12 = sshll.u32 %s4457_s21, 4  ;;  %s4688_s24 = scalar_lea.sflag [#allocation6], %s386_s28  ;;  %s4686_s12 = int_to_ptr.vmem [resolvable:$true] %s329_s12 }
  0x4b   : > { %p4158_p9 = pneg %p4682_p0  ;;  %s4169_s30 = scalar_lea.vmem %s404_s18, 128 }
  0x4c   : > { %p4170_p10 = scmp.ne.s32.totalorder %s404_s18, %s4169_s30  ;;  %s4458_s3 = smov [#allocation5]  }
  0x4e   : > { %s402_s9 = scalar_lea.hbm %s6121_s1, %s3086_s10  ;;  %p4172_p3 = pnand %p4170_p10, %p4158_p9 }
  0x4f   : > { %s4174_s10 = sshll.u32 %s4458_s3, 4  ;;  %s4175_s10 = int_to_ptr.vmem [resolvable:$false] %s4174_s10 }
  0x50   : > { %p4173_p2 = pneg %p4172_p3  ;;  %s4176_s11 = scalar_lea.vmem %s4175_s10, 256 }
  0x51   : > { %p4177_p13 = scmp.lt.s32.totalorder %s404_s18, %s4175_s10  ;;  %p4178_p11 = scmp.lt.s32.totalorder %s4176_s11, %s4169_s30 }
  0x53   : > { %p4179_p1 = por %p4178_p11, %p4177_p13 }
  0x55   : > { %p4180_p5 = pnand %p4179_p1, %p4173_p2 }
  0x57   : > { %4183 = shalt.err (!%p4180_p5)
}
  0x58   : > { %s6123_s13 = smov 4   ;;  %s6124_s19 = smov 64  }
  0x59   : > { %3877 = dma.hbm_to_vmem [thread:$0]  (!%p4682_p0), %s402_s9, 128, %s404_s18, %s4688_s24, %s6124_s19, %s6124_s19, %s6123_s13  }
  0x5a   : > { %s4195_s21 = scalar_lea.vmem %s4686_s12, 9216  ;;  %p4203_p1 = scmp.lt.s32.totalorder %s4686_s12, %s4686_s12 }
  0x5b   : > { %p4196_p3 = scmp.ne.s32.totalorder %s4686_s12, %s4195_s21  ;;  %p4204_p2 = scmp.lt.s32.totalorder %s4195_s21, %s4195_s21 }
  0x5d   : > { %p4198_p10 = pnand %p4196_p3, %p4132_p7  ;;  %p4205_p5 = por %p4204_p2, %p4203_p1 }
  0x5f   : > { %p4199_p9 = pneg %p4198_p10 }
  0x61   : > { %p4206_p11 = pnand %p4205_p5, %p4199_p9 }
  0x63   : > { %4209 = shalt.err (!%p4206_p11)
}
  0x64   : > { %s6125_s5 = sld [smem:[#allocation60_spill]]  ;;  %s4459_s28 = smov [#allocation11]  }
  0x65   : > { %s345_s8 = sshll.u32 %s4459_s28, 4  ;;  %s346_s8 = int_to_ptr.vmem [resolvable:$true] %s345_s8 }
  0x66   : > { %s4221_s18 = scalar_lea.vmem %s346_s8, 1024  ;;  %p4229_p10 = scmp.lt.s32.totalorder %s346_s8, %s346_s8 }
  0x67   : > { %p4222_p0 = scmp.ne.s32.totalorder %s346_s8, %s4221_s18  ;;  %p4230_p9 = scmp.lt.s32.totalorder %s4221_s18, %s4221_s18 }
  0x69   : > { %p4224_p13 = pnand %p4222_p0, %p4132_p7  ;;  %p4231_p1 = por %p4230_p9, %p4229_p10 }
  0x6a   : > { %3867 = dma.hbm_to_vmem [thread:$0]  (!%p4604_p6), %s6125_s5, 9216, %s4686_s12, [#allocation9], %s6124_s19, %s6124_s19, %s6123_s13  }
  0x6b   : > { %p4225_p3 = pneg %p4224_p13 }
  0x6d   : > { %p4232_p2 = pnand %p4231_p1, %p4225_p3 }
  0x6f   : > { %4235 = shalt.err (!%p4232_p2)
}
  0x70   : > { %s6126_s7 = sld [smem:[#allocation62_spill]]  ;;  %s3064_s27 = sadd.s32 4294967294, %s4452_s22  }
  0x71   : > { %s51_s4 = sadd.s32 1, %s4432_s17  ;;  %p58_p7 = scmp.ne.s32.totalorder %s4432_s17, %s4428_s16 }
  0x72   : > { %s4730_s30 = scalar_select %p49_p12, %s4432_s17, %s51_s4  }
  0x73   : > { %p64_p5 = scmp.ne.s32.totalorder %s4428_s16, %s4424_s15  ;;  %p294_p11 = scmp.eq.s32.totalorder %s3064_s27, 3 }
  0x74   : > { %s362_s3 = sand.u32 1, %s4432_s17   ;;  %p6127_p0 = scmp.eq.s32.totalorder %s4452_s22, 0 }
  0x75   : > { %p6128_p3 = scmp.eq.s32.totalorder %s4590_s23, 0  ;;  %p6130_p9 = scmp.eq.s32.totalorder %s4590_s23, 3 }
  0x76   : > { %3870 = dma.hbm_to_vmem [thread:$0]  (!%p4604_p6), %s6126_s7, 1024, %s346_s8, [#allocation12], %s6124_s19, %s6124_s19, %s6123_s13  }
  0x77   : > { %p60_p13 = por %p6127_p0, %p58_p7  ;;  %p4741_p10 = por %p6128_p3, %p64_p5 }
  0x78   : > { %p4747_p1 = por %p6130_p9, %p58_p7  ;;  %p4751_p6 = por %p294_p11, %p64_p5 }
  0x79   : > { %s3076_s21 = sshll.u32 %s362_s3, 6  ;;  %s3301_s25 = sshll.u32 %s4444_s20, 4 }
  0x7a   : > { %s6131_s11 = scalar_select %p4747_p1, 1, 0 }
  0x7b   : > { %s6132_s29 = scalar_select %p4751_p6, 1, 0 }
  0x7c   : > { %s373_s26 = sadd.s32 %s3301_s25, %s4670_s6  ;;  %s366_s28 = scalar_lea.vmem [#allocation2], %s3076_s21 }
  0x7d   : > { %s376_s8 = sshll.u32 %s366_s28, 4  ;;  %s3080_s18 = sshll.u32 %s373_s26, 6  ;;  %s377_s8 = int_to_ptr.vmem [resolvable:$true] %s376_s8 }
  0x7e   : > { %s6133_s0 = sld [smem:[#allocation55_spill]]  ;;  %p6134_p12 = scmp.lt.s32.totalorder %s4452_s22, 4 }
  0x7f   : > { %s363_s1 = scalar_lea.sflag [#allocation3], %s362_s3  ;;  %s4249_s5 = scalar_lea.vmem %s377_s8, 1024 }
  0x80   : > { %p4762_p2 = pnand %p6134_p12, %p60_p13  ;;  %p4250_p5 = scmp.ne.s32.totalorder %s377_s8, %s4249_s5 }
  0x81   : > { %s4460_s21 = smov [#allocation2]  }
  0x82   : > { %p4238_p7 = pneg %p4762_p2  ;;  %s4254_s25 = sshll.u32 %s4460_s21, 4  ;;  %s4255_s25 = int_to_ptr.vmem [resolvable:$false] %s4254_s25 }
  0x83   : > { %s4256_s26 = scalar_lea.vmem %s4255_s25, 2048  ;;  %p4257_p3 = scmp.lt.s32.totalorder %s377_s8, %s4255_s25 }
  0x84   : > { %s375_s27 = scalar_lea.hbm %s6133_s0, %s3080_s18  ;;  %p4252_p11 = pnand %p4250_p5, %p4238_p7 }
  0x85   : > { %p4258_p9 = scmp.lt.s32.totalorder %s4256_s26, %s4249_s5 }
  0x86   : > { %p4253_p0 = pneg %p4252_p11 }
  0x87   : > { %p4259_p6 = por %p4258_p9, %p4257_p3 }
  0x89   : > { %p4260_p1 = pnand %p4259_p6, %p4253_p0 }
  0x8b   : > { %4263 = shalt.err (!%p4260_p1)
}
  0x8c   : > { %s6136_s3 = sld [smem:[#allocation22_spill]]  ;;  %p6142_p1 = scmp.lt.s32.totalorder %s4662_s2, 15 }
  0x8d   : > { %s6137_s28 = sld [smem:[#allocation32_spill]]  ;;  %p6143_p7 = scmp.eq.s32.totalorder %s4452_s22, 0 }
  0x8e   : > { %s6138_s18 = sld [smem:[#allocation21_spill]]  ;;  %s6340_s2 = smov (!%p6142_p1, %s4662_s2), 15 }
  0x8f   : > { %s6139_s12 = sld [smem:[#allocation20_spill]]  ;;  %p6144_p0 = scmp.eq.s32.totalorder %s4590_s23, 0 }
  0x90   : > { %s6140_s9 = sld [smem:[#allocation31_spill]] }
  0x91   : > { %3874 = dma.hbm_to_vmem [thread:$0]  (!%p4762_p2), %s375_s27, 1024, %s377_s8, %s363_s1, %s6124_s19, %s6124_s19, %s6123_s13  }
  0x92   : > { %s123_s5 = sadd.s32 1, %s6136_s3  ;;  %s415_s21 = sand.u32 1, %s6136_s3  }
  0x93   : > { %p6141_p13 = scmp.lt.s32.totalorder %s6137_s28, 15  ;;  %s3087_s1 = sshll.u32 %s415_s21, 3 }
  0x94   : > { %p130_p6 = scmp.ne.s32.totalorder %s6136_s3, %s6138_s18  ;;  %s417_s7 = scalar_lea.vmem [#allocation7], %s3087_s1 }
  0x95   : > { %s6338_s28 = smov (!%p6141_p13, %s6137_s28), 15  ;;  %p136_p12 = scmp.ne.s32.totalorder %s6138_s18, %s6139_s12 }
  0x96   : > { %s119_s4 = ssub.s32 %s6338_s28, %s6340_s2  ;;  %p132_p5 = por %p130_p6, %p6143_p7 }
  0x97   : > { %s120_s25 = sor.u32 %s119_s4, %s6140_s9  ;;  %p4790_p3 = por %p136_p12, %p6144_p0 }
  0x98   : > { %p121_p11 = scmp.eq.s32.totalorder %s120_s25, 0  ;;  %s3089_s8 = sshll.u32 %s6338_s28, 1 }
  0x99   : > { %s6145_s26 = scalar_select %p4790_p3, 1, 0 }
  0x9a   : > { %s6342_s3 = smov (!%p121_p11, %s6136_s3), %s123_s5  ;;  %s427_s27 = sadd.s32 %s3089_s8, %s4670_s6 }
  0x9b   : > { %s3091_s0 = sshll.u32 %s427_s27, 6  ;;  %s430_s18 = sshll.u32 %s417_s7, 4  ;;  %s431_s18 = int_to_ptr.vmem [resolvable:$true] %s430_s18 }
  0x9c   : > { %s6146_s20 = sld [smem:[#allocation57_spill]]  ;;  %p6147_p2 = scmp.lt.s32.totalorder %s4452_s22, 4 }
  0x9d   : > { %s4277_s28 = scalar_lea.vmem %s431_s18, 128  ;;  %s4461_s6 = smov [#allocation7]  }
  0x9e   : > { %p4803_p9 = pnand %p6147_p2, %p132_p5  ;;  %p4278_p1 = scmp.ne.s32.totalorder %s431_s18, %s4277_s28 }
  0x9f   : > { %s4282_s5 = sshll.u32 %s4461_s6, 4  ;;  %s4283_s5 = int_to_ptr.vmem [resolvable:$false] %s4282_s5 }
  0xa0   : > { %p4266_p13 = pneg %p4803_p9  ;;  %s4284_s7 = scalar_lea.vmem %s4283_s5, 256 }
  0xa1   : > { %p4285_p7 = scmp.lt.s32.totalorder %s431_s18, %s4283_s5  ;;  %p4286_p11 = scmp.lt.s32.totalorder %s4284_s7, %s4277_s28 }
  0xa2   : > { %s429_s9 = scalar_lea.hbm %s6146_s20, %s3091_s0  ;;  %p4280_p6 = pnand %p4278_p1, %p4266_p13 }
  0xa3   : > { %p4287_p0 = por %p4286_p11, %p4285_p7 }
  0xa4   : > { %p4281_p12 = pneg %p4280_p6 }
  0xa6   : > { %p4288_p3 = pnand %p4287_p0, %p4281_p12 }
  0xa8   : > { %4291 = shalt.err (!%p4288_p3)
}
  0xa9   : > { %3880 = dma.hbm_to_vmem [thread:$0]  (!%p4803_p9), %s429_s9, 128, %s431_s18, %s4688_s24, %s6124_s19, %s6124_s19, %s6123_s13  }
  0xaa   : > { %442 = sbr.rel (%p4596_p4) target bundleno = 1058 (0x422), region = 56 }
  0xaf   : > { %s4818_s20 = sand.u32 1, %s4428_s16  }
  0xb0   : > { %s3093_s21 = sshll.u32 %s4818_s20, 6  ;;  %s445_s25 = scalar_lea.sflag [#allocation3], %s4818_s20 }
  0xb1   : > { %s4824_s1 = scalar_lea.vmem [#allocation2], %s3093_s21 }
  0xb2   : > { %4375 = dma.done.wait (%p4741_p10), %s445_s25, 1024  }
  0xb3   : > { %4377 = vsyncadd (%p4741_p10), %s445_s25, 4294966272  ;;  %s6150_s24 = sld [smem:[#allocation23_spill]]  ;;  %s453_s19 = sand.u32 1, %s4590_s23  }
  0xb4   : > { %s454_s18 = scalar_lea.sflag [#allocation6], %s453_s19 }
  0xb9   : > { %s455_s8 = sand.u32 1, %s6150_s24  }
  0xba   : > { %s4832_s27 = sshll.u32 %s455_s8, 3 }
  0xbb   : > { %s457_s12 = scalar_lea.vmem [#allocation5], %s4832_s27 }
  0xbc   : > { %4379 = dma.done.wait (%p4658_p8), %s454_s18, 128  }
  0xbd   : > { %4381 = vsyncadd (%p4658_p8), %s454_s18, 4294967168  ;;  %s6152_s2 = sld [smem:[#allocation21_spill]]  ;;  %p6153_p4 = scmp.ne.s32.totalorder %s6145_s26, 0 }
  0xc3   : > { %s464_s9 = sand.u32 1, %s6152_s2  }
  0xc4   : > { %s4840_s10 = sshll.u32 %s464_s9, 3 }
  0xc5   : > { %s466_s4 = scalar_lea.vmem [#allocation7], %s4840_s10 }
  0xc6   : > { %4383 = dma.done.wait (%p6153_p4), %s454_s18, 128  }
  0xc7   : > { %4385 = vsyncadd (%p6153_p4), %s454_s18, 4294967168  ;;  %p6154_p10 = scmp.eq.s32.totalorder %s4590_s23, 0 }
  0xc9   : > { %4387 = dma.done.wait (%p6154_p10), [#allocation9], 10240   ;;  %p6155_p5 = pmov %p6154_p10 }
  0xcb   : > { %4389 = vsyncadd (%p6155_p5), [#allocation9], 4294957056  ;;  %p6156_p8 = pmov %p6155_p5 }
  0xcc   : > { %p6157_p3 = pmov %p6155_p5 }
  0xcd   : > { %4391 = dma.done.wait (%p6156_p8), [#allocation12], 1024  }
  0xce   : > { %4393 = vsyncadd (%p6157_p3), [#allocation12], 4294966272  ;;  %v4462_v0 = vmov 0.0   ;;  %vm4463_vm0 = vmmov 0   ;;  %v4016_v1 = vld [vmem:[#allocation8 + $0x38] sm:$0xff]   ;;  %v4017_v2 = vld [vmem:[#allocation8 + $0x30] sm:$0xff]   ;;  %v784_v53 = vlaneseq }
  0xcf   : > { %3721 = vmatprep.subr.bf16.mxu1 %v4462_v0  ;;  %3737 = vmatprep.mubr.msk.bf16.mxu1 %vm4463_vm0, %v4462_v0  ;;  %v4018_v3 = vld [vmem:[#allocation8 + $0x28] sm:$0xff]   ;;  %v4019_v4 = vld [vmem:[#allocation8 + $0x20] sm:$0xff]   ;;  %v4020_v6 = vld [vmem:[#allocation8 + $0x18] sm:$0xff]   ;;  %s6158_s23 = sld [smem:[#allocation24_spill]]  ;;  %vm4464_vm3 = vmmov 1   ;;  %s5923_s27 = scalar_lea.vmem [#allocation13], %s3093_s21 }
  0xd0   : > { %3689 = vmatprep.subr.bf16.mxu0 %v4016_v1  ;;  %3722 = vmatpush3.bf16.msra.mxu1 %v4016_v1  ;;  %v553_v5 = vld [vmem:[%s4824_s1] sm:$0xff]   ;;  %v4021_v7 = vld [vmem:[#allocation8 + $0x10] sm:$0xff]   ;;  %v4022_v8 = vld [vmem:[#allocation8 + $0x8] sm:$0xff]   ;;  %v4887_v54 = vshrl.u32 %v784_v53, 7  ;;  %s6163_s5 = sld [smem:[#allocation59_spill]]  ;;  %s2895_s2 = sshll.u32 %s5923_s27, 4  ;;  %s5948_s2 = int_to_ptr.vmem [resolvable:$true] %s2895_s2 }
  0xd1   : > { %3690 = vmatpush3.bf16.msra.mxu0 %v4016_v1  ;;  %3723 = vmatprep.subr.bf16.mxu1 %v4462_v0  ;;  %v4023_v9 = vld [vmem:[#allocation8] sm:$0xff]   ;;  %v555_v10 = vld [vmem:[%s4824_s1 + $0x8] sm:$0xff]   ;;  %v557_v11 = vld [vmem:[%s4824_s1 + $0x10] sm:$0xff]   ;;  %s6263_s24 = sld [smem:[#allocation61_spill]]  ;;  %s2880_s28 = scalar_lea.sflag [#allocation4], %s4818_s20 }
  0xd2   : > { %3691 = vmatprep.subr.bf16.mxu0 %v4017_v2  ;;  %3705 = vmatprep.mubr.bf16.mxu0 %v553_v5  ;;  %v4025_v12 = vld [vmem:[%s457_s12] sm:$0xff]   ;;  %v559_v13 = vld [vmem:[%s4824_s1 + $0x18] sm:$0xff]   ;;  %v565_v16 = vld [vmem:[%s4824_s1 + $0x30] sm:$0xff]   ;;  %v805_v55 = vand.u32 15, %v4887_v54  ;;  %v786_v56 = vadd.s32 8, %v4887_v54  ;;  %v787_v57 = vadd.s32 16, %v4887_v54 }
  0xd3   : > { %v561_v14 = vld [vmem:[%s4824_s1 + $0x20] sm:$0xff]   ;;  %v563_v15 = vld [vmem:[%s4824_s1 + $0x28] sm:$0xff]   ;;  %v567_v17 = vld [vmem:[%s4824_s1 + $0x38] sm:$0xff]   ;;  %v788_v62 = vadd.s32 24, %v4887_v54  ;;  %v789_v5 = vadd.s32 32, %v4887_v54  ;;  %vm6083_vm10 = vcmp.lt.s32.totalorder %v4887_v54, 1 }
  0xd4   : > { %3724 = vmatpush3.bf16.msra.mxu1 %v4017_v2  ;;  %v4034_v18 = vld [vmem:[#allocation10 + $0xf8] sm:$0xff]   ;;  %v4036_v21 = vld [vmem:[#allocation10 + $0xf0] sm:$0xff]   ;;  %v4038_v23 = vld [vmem:[#allocation10 + $0xe8] sm:$0xff]   ;;  %vm993_vm1 = vcmp.ge.s32.totalorder %v805_v55, 1  ;;  %v812_v58 = vand.u32 15, %v786_v56  ;;  %v819_v59 = vand.u32 15, %v787_v57 }
  0xd5   : > { %3692 = vmatpush3.bf16.msra.mxu0 %v4017_v2  ;;  %3725 = vmatprep.subr.bf16.mxu1 %v4462_v0  ;;  %v4033_v19 = vld [vmem:[%s466_s4] sm:$0xff]   ;;  %v4039_v24 = vld [vmem:[#allocation10 + $0xa8] sm:$0xff]   ;;  %v4040_v25 = vld [vmem:[#allocation10 + $0xe0] sm:$0xff]   ;;  %p1025_p2 = scmp.eq.s32.totalorder %s6158_s23, 0  ;;  %vm6082_vm12 = vcmp.lt.s32.totalorder %v4887_v54, 7  ;;  %v793_v56 = vadd.s32 64, %v4887_v54 }
  0xd6   : > { %3693 = vmatprep.subr.bf16.mxu0 %v4018_v3  ;;  %v4035_v20 = vld [vmem:[#allocation10 + $0xb8] sm:$0xff]   ;;  %v4037_v22 = vld [vmem:[#allocation10 + $0xb0] sm:$0xff]   ;;  %v4041_v26 = vld [vmem:[#allocation10 + $0xa0] sm:$0xff]   ;;  %vm4893_vm5 = vcmp.lt.s32.totalorder %v812_v58, 15  ;;  %vm4897_vm6 = vcmp.ge.s32.totalorder %v819_v59, 1  ;;  %p1082_p9 = scmp.eq.s32.totalorder %s6158_s23, 1 }
  0xd7   : > { %v4042_v27 = vld [vmem:[#allocation10 + $0xd8] sm:$0xff]   ;;  %v4044_v29 = vld [vmem:[#allocation10 + $0xd0] sm:$0xff]   ;;  %v4046_v31 = vld [vmem:[#allocation10 + $0xc8] sm:$0xff]   ;;  %s1077_s26 = scalar_select %p1025_p2, 1, 0 }
  0xd8   : > { %3726 = vmatpush3.bf16.msra.mxu1 %v4018_v3  ;;  %v4043_v28 = vld [vmem:[#allocation10 + $0x98] sm:$0xff]   ;;  %v4045_v30 = vld [vmem:[#allocation10 + $0x90] sm:$0xff]   ;;  %v4047_v32 = vld [vmem:[#allocation10 + $0x88] sm:$0xff]   ;;  %s5075_s7 = scalar_select %p1082_p9, 1, 0 }
  0xd9   : > { %3694 = vmatpush3.bf16.msra.mxu0 %v4018_v3  ;;  %3727 = vmatprep.subr.bf16.mxu1 %v4462_v0  ;;  %v4048_v33 = vld [vmem:[#allocation10 + $0xc0] sm:$0xff]   ;;  %v4050_v35 = vld [vmem:[#allocation10 + $0x78] sm:$0xff]   ;;  %v4052_v37 = vld [vmem:[#allocation10 + $0x70] sm:$0xff]   ;;  %s6304_s8 = sld [smem:[#allocation63_spill]]  ;;  %s3292_s18 = sshll.u32 %s6158_s23, 4 }
  0xda   : > { %3695 = vmatprep.subr.bf16.mxu0 %v4019_v4  ;;  %v4049_v34 = vld [vmem:[#allocation10 + $0x80] sm:$0xff]   ;;  %v4051_v36 = vld [vmem:[#allocation10 + $0x38] sm:$0xff]   ;;  %v4053_v38 = vld [vmem:[#allocation10 + $0x30] sm:$0xff]   ;;  %s6305_s21 = sld [smem:[#allocation25_spill]]  ;;  %s4292_s6 = scalar_lea.vmem %s5948_s2, 1024 }
  0xdb   : > { %v4054_v39 = vld [vmem:[#allocation10 + $0x68] sm:$0xff]   ;;  %v4056_v41 = vld [vmem:[#allocation10 + $0x60] sm:$0xff]   ;;  %v4058_v43 = vld [vmem:[#allocation10 + $0x58] sm:$0xff]   ;;  %s6306_s23 = sld [smem:[#allocation64_spill]]  ;;  %p4293_p13 = scmp.ne.s32.totalorder %s5948_s2, %s4292_s6 }
  0xdc   : > { %3728 = vmatpush3.bf16.msra.mxu1 %v4019_v4  ;;  %v4055_v40 = vld [vmem:[#allocation10 + $0x28] sm:$0xff]   ;;  %v4057_v42 = vld [vmem:[#allocation10 + $0x20] sm:$0xff]   ;;  %v4059_v44 = vld [vmem:[#allocation10 + $0x18] sm:$0xff]   ;;  %p6307_p1 = scmp.ne.s32.totalorder %s6131_s11, 0 }
  0xdd   : > { %3696 = vmatpush3.bf16.msra.mxu0 %v4019_v4  ;;  %3729 = vmatprep.subr.bf16.mxu1 %v4462_v0  ;;  %v4060_v45 = vld [vmem:[#allocation10 + $0x50] sm:$0xff]   ;;  %v4062_v47 = vld [vmem:[#allocation10 + $0x48] sm:$0xff]   ;;  %v4064_v49 = vld [vmem:[#allocation10 + $0x40] sm:$0xff]  }
  0xde   : > { %3697 = vmatprep.subr.bf16.mxu0 %v4020_v6  ;;  %v4061_v46 = vld [vmem:[#allocation10 + $0x10] sm:$0xff]   ;;  %v4063_v48 = vld [vmem:[#allocation10 + $0x8] sm:$0xff]   ;;  %v4065_v50 = vld [vmem:[#allocation10] sm:$0xff]   ;;  %p4294_p6 = pnand %p4293_p13, %p6307_p1 }
  0xdf   : > { %v4066_v51 = vld [vmem:[#allocation10 + $0x178] sm:$0xff]   ;;  %vm1213_vm2 = vmpackc.low %vm993_vm1, %vm993_vm1  ;;  %v4905_v63 = vld [vmem:[%s6163_s5] ss:$0 sm:$0xff]  ;;  %s4466_s5 = smov [#allocation13]  }
  0xe0   : > { %3730 = vmatpush3.bf16.msra.mxu1 %v4020_v6  ;;  %v4068_v52 = vld [vmem:[#allocation10 + $0x1f8] sm:$0xff]   ;;  %vm1214_vm4 = vmpackc.low %vm4464_vm3, %vm4464_vm3  ;;  %s3293_s12 = sshll.u32 %s6305_s21, 5  ;;  %p4295_p12 = pneg %p4294_p6 }
  0xe1   : > { %3698 = vmatpush3.bf16.msra.mxu0 %v4020_v6  ;;  %3731 = vmatprep.subr.bf16.mxu1 %v4462_v0  ;;  %vm1368_vm7 = vmpackc.low %vm4893_vm5, %vm4893_vm5 }
  0xe2   : > { %3699 = vmatprep.subr.bf16.mxu0 %v4021_v7  ;;  %vm1215_vm8 = vmpackc.low %vm4897_vm6, %vm4897_vm6 }
  0xe4   : > { %3732 = vmatpush3.bf16.msra.mxu1 %v4021_v7 }
  0xe5   : > { %3700 = vmatpush3.bf16.msra.mxu0 %v4021_v7  ;;  %3733 = vmatprep.subr.bf16.mxu1 %v4462_v0 }
  0xe6   : > { %3701 = vmatprep.subr.bf16.mxu0 %v4022_v8 }
  0xe8   : > { %3734 = vmatpush3.bf16.msra.mxu1 %v4022_v8 }
  0xe9   : > { %3702 = vmatpush3.bf16.msra.mxu0 %v4022_v8  ;;  %3735 = vmatprep.subr.bf16.mxu1 %v4462_v0 }
  0xea   : > { %3703 = vmatprep.subr.bf16.mxu0 %v4023_v9 }
  0xec   : > { %3736 = vmatpush3.bf16.msra.mxu1 %v4023_v9 }
  0xed   : > { %3704 = vmatpush3.bf16.msra.mxu0 %v4023_v9  ;;  %3401 = vmatprep.subr.bf16.mxu1 %v4050_v35 }
  0xee   : > { %3741 = vmatprep.subr.bf16.mxu0 %v4462_v0 }
  0xef   : > { %3738 = vmatmul.mubr.bf16.vlgmr.msra.gmra.mxu1 %v4025_v12 }
  0xf0   : > { %3706 = vmatmul.mubr.bf16.vlgmr.msra.gmra.mxu0 %v555_v10  ;;  %3402 = vmatpush3.bf16.msra.mxu1 %v4051_v36  ;;  %v790_v10 = vadd.s32 40, %v4887_v54 }
  0xf1   : > { %3742 = vmatpush3.bf16.msra.mxu0 %v4016_v1  ;;  %3709 = vmatprep.mubr.bf16.mxu0 %v557_v11  ;;  %v1078_v1 = vstv %s1077_s26 }
  0xf2   : > { %3743 = vmatprep.subr.bf16.mxu0 %v4462_v0  ;;  %3403 = vmatprep.subr.bf16.mxu1 %v4052_v37  ;;  %vm4920_vm9 = vcmp.eq.s32.totalorder %v1078_v1, 1 }
  0xf3   : > { %vm3208_vm11 = vmneg %vm4920_vm9 }
  0xf4   : > { %3404 = vmatpush3.bf16.msra.mxu1 %v4053_v38 }
  0xf5   : > { %3744 = vmatpush3.bf16.msra.mxu0 %v4017_v2  ;;  %3405 = vmatprep.subr.bf16.mxu1 %v4054_v39  ;;  %v6066_v2 = vmov 0  }
  0xf6   : > { %3745 = vmatprep.subr.bf16.mxu0 %v4462_v0 }
  0xf8   : > { %3710 = vmatmul.mubr.bf16.gmra.mxu0 %v559_v13  ;;  %3406 = vmatpush3.bf16.msra.mxu1 %v4055_v40 }
  0xf9   : > { %3746 = vmatpush3.bf16.msra.mxu0 %v4018_v3  ;;  %3713 = vmatprep.mubr.bf16.mxu0 %v561_v14  ;;  %v1229_v3 = vsel %vm1213_vm2, 65537, %v6066_v2  ;;  %v1384_v14 = vsel %vm1368_vm7, 65537, %v6066_v2 }
  0xfa   : > { %3747 = vmatprep.subr.bf16.mxu0 %v4462_v0  ;;  %3407 = vmatprep.subr.bf16.mxu1 %v4056_v41 }
  0xfc   : > { %3408 = vmatpush3.bf16.msra.mxu1 %v4057_v42  ;;  %v792_v42 = vadd.s32 56, %v4887_v54 }
  0xfd   : > { %3748 = vmatpush3.bf16.msra.mxu0 %v4019_v4  ;;  %3409 = vmatprep.subr.bf16.mxu1 %v4058_v43  ;;  %v4909_v4 = vsel %vm1214_vm4, 65537, %v6066_v2 }
  0xfe   : > { %3749 = vmatprep.subr.bf16.mxu0 %v4462_v0  ;;  %v3119_v13 = vcombine.low %v1229_v3, %v4909_v4  ;;  %v854_v61 = vand.u32 15, %v792_v42  ;;  %v794_v3 = vadd.s32 72, %v4887_v54 }
 0x100   : > { %3714 = vmatmul.mubr.bf16.gmra.mxu0 %v563_v15  ;;  %3410 = vmatpush3.bf16.msra.mxu1 %v4059_v44  ;;  %vm4947_vm14 = vcmp.ne.s16.totalorder %v3119_v13, 0 }
 0x101   : > { %3750 = vmatpush3.bf16.msra.mxu0 %v4020_v6  ;;  %3717 = vmatprep.mubr.bf16.mxu0 %v565_v16 }
 0x102   : > { %3751 = vmatprep.subr.bf16.mxu0 %v4462_v0  ;;  %3411 = vmatprep.subr.bf16.mxu1 %v4060_v45 }
 0x104   : > { %3412 = vmatpush3.bf16.msra.mxu1 %v4061_v46  ;;  %v4071_v46 = vld [vmem:[#allocation10 + $0x1b0] sm:$0xff]  }
 0x105   : > { %3752 = vmatpush3.bf16.msra.mxu0 %v4021_v7  ;;  %3413 = vmatprep.subr.bf16.mxu1 %v4062_v47 }
 0x106   : > { %3753 = vmatprep.subr.bf16.mxu0 %v4462_v0 }
 0x108   : > { %3718 = vmatmul.mubr.bf16.gmra.mxu0 %v567_v17  ;;  %3414 = vmatpush3.bf16.msra.mxu1 %v4063_v48  ;;  %v1231_v17 = vsel %vm1215_vm8, 65537, %v6066_v2  ;;  %vm5047_vm8 = vcmp.lt.s32.totalorder %v854_v61, 15  ;;  %v6191_v61 = vmov 0 }
 0x109   : > { %3754 = vmatpush3.bf16.msra.mxu0 %v4022_v8  ;;  %3757 = vmatprep.mubr.msk.bf16.mxu0 %vm4463_vm0, %v4462_v0  ;;  %vm4959_vm0 = vmpackc.low %vm3208_vm11, %vm3208_vm11 }
 0x10a   : > { %3755 = vmatprep.subr.bf16.mxu0 %v4462_v0  ;;  %3415 = vmatprep.subr.bf16.mxu1 %v4064_v49 }
 0x10c   : > { %3416 = vmatpush3.bf16.msra.mxu1 %v4065_v50  ;;  %v6176_v50 = vmov 0 }
 0x10d   : > { %3756 = vmatpush3.bf16.msra.mxu0 %v4023_v9  ;;  %3529 = vmatprep.subr.bf16.mxu1 %v4066_v51  ;;  %v826_v9 = vand.u32 15, %v788_v62 }
 0x10e   : > { %3465 = vmatprep.subr.bf16.mxu0 %v4034_v18  ;;  %v833_v18 = vand.u32 15, %v789_v5 }
 0x10f   : > { %vm4935_vm13 = vcmp.lt.s32.totalorder %v826_v9, 15  ;;  %v795_v9 = vadd.s32 80, %v4887_v54 }
 0x110   : > { %3758 = vmatmul.mubr.bf16.vlgmr.msra.gmra.mxu0 %v4033_v19  ;;  %v791_v19 = vadd.s32 48, %v4887_v54  ;;  %vm4951_vm15 = vcmp.ge.s32.totalorder %v833_v18, 1  ;;  %vm1370_vm1 = vmpackc.low %vm4935_vm13, %vm4935_vm13  ;;  %v861_v18 = vand.u32 15, %v793_v56  ;;  %v4074_v56 = vld [vmem:[#allocation10 + $0x1e8] sm:$0xff]  }
 0x111   : > { %3466 = vmatpush3.bf16.msra.mxu0 %v4035_v20  ;;  %v4999_v53 = vsel %vm1370_vm1, 65537, %v6066_v2  ;;  %vm1217_vm5 = vmpackc.low %vm4951_vm15, %vm4951_vm15 }
 0x112   : > { %3467 = vmatprep.subr.bf16.mxu0 %v4036_v21  ;;  %v847_v36 = vand.u32 15, %v791_v19  ;;  %v4069_v19 = vld [vmem:[#allocation10 + $0x1b8] sm:$0xff]   ;;  %vm5091_vm11 = vcmp.ge.s32.totalorder %v861_v18, 1  ;;  %vm1374_vm13 = vmpackc.low %vm5047_vm8, %vm5047_vm8 }
 0x114   : > { %vm5004_vm6 = vcmp.ge.s32.totalorder %v847_v36, 1 }
 0x115   : > { %3468 = vmatpush3.bf16.msra.mxu0 %v4037_v22 }
 0x116   : > { %3469 = vmatprep.subr.bf16.mxu0 %v4038_v23 }
 0x119   : > { %3470 = vmatpush3.bf16.msra.mxu0 %v4039_v24  ;;  %v4070_v24 = vld [vmem:[#allocation10 + $0x1f0] sm:$0xff]  }
 0x11a   : > { %3471 = vmatprep.subr.bf16.mxu0 %v4040_v25 }
 0x11d   : > { %3472 = vmatpush3.bf16.msra.mxu0 %v4041_v26  ;;  %v840_v26 = vand.u32 15, %v790_v10 }
 0x11e   : > { %3473 = vmatprep.subr.bf16.mxu0 %v4042_v27 }
 0x11f   : > { %vm4981_vm2 = vcmp.lt.s32.totalorder %v840_v26, 15 }
 0x120   : > { %vm1372_vm7 = vmpackc.low %vm4981_vm2, %vm4981_vm2 }
 0x121   : > { %3474 = vmatpush3.bf16.msra.mxu0 %v4043_v28  ;;  %v1388_v13 = vsel %vm1372_vm7, 65537, %v6066_v2  ;;  %vm1221_vm2 = vmpackc.low %vm5091_vm11, %vm5091_vm11 }
 0x122   : > { %3475 = vmatprep.subr.bf16.mxu0 %v4044_v29 }
 0x125   : > { %3476 = vmatpush3.bf16.msra.mxu0 %v4045_v30  ;;  %v3127_v30 = vcombine.low %v4909_v4, %v1384_v14 }
 0x126   : > { %3477 = vmatprep.subr.bf16.mxu0 %v4046_v31  ;;  %v3120_v31 = vcombine.low %v1231_v17, %v4909_v4 }
 0x127   : > { %vm4987_vm3 = vcmp.ne.s16.totalorder %v3127_v30, 0  ;;  %v3128_v30 = vcombine.low %v4909_v4, %v4999_v53 }
 0x128   : > { %v6177_v50 = vsel %vm4987_vm3, 4294967295, %v6176_v50  ;;  %vm4991_vm4 = vcmp.ne.s16.totalorder %v3120_v31, 0 }
 0x129   : > { %3478 = vmatpush3.bf16.msra.mxu0 %v4047_v32  ;;  %6178 = vst [vmem:[#allocation35_spill] sm:$0xff] %v6177_v50  ;;  %vm5116_vm1 = vcmp.ne.s16.totalorder %v3128_v30, 0 }
 0x12a   : > { %3479 = vmatprep.subr.bf16.mxu0 %v4048_v33  ;;  %v6192_v61 = vsel %vm5116_vm1, 4294967295, %v6191_v61 }
 0x12b   : > { %6193 = vst [vmem:[#allocation36_spill] sm:$0xff] %v6192_v61 }
 0x12d   : > { %3480 = vmatpush3.bf16.msra.mxu0 %v4049_v34 }
 0x12e   : > { %3593 = vmatprep.subr.bf16.mxu0 %v4068_v52 }
 0x1af   : > { %v1068_v0 = vpop.f32.mrf.mxu1 }
 0x1b0   : > { %v1069_v6 = vadd.f32 %v4905_v63, %v1068_v0  ;;  %v3707_v7 = vpop.f32.mrf.mxu0 }
 0x1b1   : > { %v3739_v8 = vpop.f32.mrf.mxu1  ;;  %v714_v23 = vadd.f32 %v3707_v7, %v4905_v63 }
 0x1b2   : > { %v705_v12 = vpop.f32.mrf.mxu0  ;;  %v1075_v15 = vmax.f32 %v1069_v6, 0.0 }
 0x1b3   : > { %v1071_v16 = vpop.f32.mrf.mxu1  ;;  %v706_v20 = vadd.f32 %v4905_v63, %v705_v12  ;;  %v4975_v43 = vmax.f32 %v714_v23, 0.0  ;;  %v1233_v12 = vsel %vm1217_vm5, 65537, %v6066_v2  ;;  %v868_v23 = vand.u32 15, %v794_v3 }
 0x1b4   : > { %v1072_v21 = vadd.f32 %v4905_v63, %v1071_v16  ;;  %v3708_v22 = vpop.f32.mrf.mxu0  ;;  %v4944_v32 = vsel %vm4920_vm9, 0.0, %v1075_v15  ;;  %v3121_v31 = vcombine.low %v1233_v12, %v4909_v4 }
 0x1b5   : > { %v3740_v25 = vpop.f32.mrf.mxu1  ;;  %v717_v28 = vadd.f32 %v3708_v22, %v4905_v63  ;;  %v4963_v38 = vmax.f32 %v706_v20, 0.0  ;;  %v6068_v47 = vrot.slane %v4944_v32, 1  ;;  %v1143_v62 = vrot.slane %v4975_v43, 7 }
 0x1b6   : > { %v1076_v27 = vmax.f32 %v1072_v21, 0.0  ;;  %v708_v29 = vpop.f32.mrf.mxu0  ;;  %v1297_v35 = vrot.slane %v4975_v43, 1  ;;  %vm5102_vm15 = vcmp.lt.s32.totalorder %v868_v23, 15  ;;  %vm5128_vm5 = vcmp.ne.s16.totalorder %v3121_v31, 0 }
 0x1b7   : > { %v709_v33 = vadd.f32 %v4905_v63, %v708_v29  ;;  %v4977_v44 = vmax.f32 %v717_v28, 0.0  ;;  %v1141_v57 = vrot.slane %v4963_v38, 7  ;;  %v1295_v58 = vrot.slane %v4963_v38, 1  ;;  %vm1376_vm7 = vmpackc.low %vm5102_vm15, %vm5102_vm15 }
 0x1b8   : > { %v4967_v39 = vsel %vm4920_vm9, 0.0, %v1076_v27  ;;  %v3211_v40 = vpack.c.bf16 %v1076_v27, %v1075_v15  ;;  %v4969_v41 = vpop.f32.mrf.mxu0  ;;  %vm1219_vm9 = vmpackc.low %vm5004_vm6, %vm5004_vm6  ;;  %v875_v29 = vand.u32 15, %v795_v9  ;;  %v5185_v23 = vsel %vm1376_vm7, 65537, %v6066_v2 }
 0x1b9   : > { %v4979_v45 = vmax.f32 %v709_v33, 0.0  ;;  %v1294_v48 = vrot.slane %v4967_v39, 1  ;;  %v6069_v52 = vrot.slane %v4967_v39, 7  ;;  %v1144_v0 = vrot.slane %v4977_v44, 7 }
 0x1ba   : > { %v721_v49 = vpop.f32.mrf.mxu0  ;;  %3212 = vmatprep.mubr.msk.bf16.mxu1 %vm4959_vm0, %v3211_v40  ;;  %v3129_v33 = vcombine.low %v4909_v4, %v1388_v13  ;;  %v1235_v40 = vsel %vm1219_vm9, 65537, %v6066_v2  ;;  %vm5112_vm0 = vcmp.ge.s32.totalorder %v875_v29, 1  ;;  %v4076_v13 = vld [vmem:[#allocation10 + $0x1e0] sm:$0xff]  }
 0x1bb   : > { %v1142_v59 = vrot.slane %v4979_v45, 7  ;;  %v722_v1 = vadd.f32 %v4905_v63, %v721_v49  ;;  %v1325_v5 = vsel %vm6082_vm12, %v1294_v48, %v1295_v58  ;;  %v1326_v6 = vsel %vm6082_vm12, %v6068_v47, %v1294_v48  ;;  %vm1223_vm8 = vmpackc.low %vm5112_vm0, %vm5112_vm0 }
 0x1bc   : > { %v3712_v60 = vpop.f32.mrf.mxu0  ;;  %v1170_v10 = vsel %vm6083_vm10, %v6069_v52, %v1141_v57  ;;  %v1327_v20 = vpack.c.bf16 %v1325_v5, %v1326_v6  ;;  %v1167_v22 = vsel %vm6083_vm10, %v1143_v62, %v1144_v0  ;;  %v1296_v25 = vrot.slane %v4979_v45, 1 }
 0x1bd   : > { %v1169_v8 = vsel %vm6083_vm10, %v1141_v57, %v1142_v59  ;;  %v1168_v11 = vsel %vm6083_vm10, %v1142_v59, %v1143_v62  ;;  %v5051_v21 = vmax.f32 %v722_v1, 0.0  ;;  %v730_v48 = vadd.f32 %v4969_v41, %v4905_v63 }
 0x1be   : > { %v724_v7 = vpop.f32.mrf.mxu0  ;;  %v5045_v16 = vpack.c.bf16 %v1169_v8, %v1170_v10  ;;  %v5066_v28 = vpack.c.bf16 %v1167_v22, %v1168_v11  ;;  %v733_v53 = vadd.f32 %v3712_v60, %v4905_v63  ;;  %v1323_v41 = vsel %vm6082_vm12, %v1296_v25, %v1297_v35  ;;  %v4075_v8 = vld [vmem:[#allocation10 + $0x1a8] sm:$0xff]  }
 0x1bf   : > { %v725_v14 = vadd.f32 %v4905_v63, %v724_v7  ;;  %v1145_v49 = vrot.slane %v5051_v21, 7  ;;  %v1324_v59 = vsel %vm6082_vm12, %v1295_v58, %v1296_v25  ;;  %v1135_v1 = vstv %s5075_s7  ;;  %s4296_s7 = sshll.u32 %s4466_s5, 4  ;;  %s4297_s7 = int_to_ptr.vmem [resolvable:$false] %s4296_s7 }
 0x1c0   : > { %v5043_v15 = vpop.f32.mrf.mxu0  ;;  %3221 = vmatprep.mubr.msk.bf16.mxu0 %vm4947_vm14, %v5045_v16  ;;  %vm5132_vm6 = vcmp.ne.s16.totalorder %v3129_v33, 0  ;;  %v6196_v5 = vmov 0  ;;  %v3122_v6 = vcombine.low %v1235_v40, %v4909_v4  ;;  %v1390_v7 = vsel %vm1374_vm13, 65537, %v6066_v2  ;;  %v4077_v40 = vld [vmem:[#allocation10 + $0x1a0] sm:$0xff]   ;;  %s4298_s0 = scalar_lea.vmem %s4297_s7, 2048  ;;  %p4299_p7 = scmp.lt.s32.totalorder %s5948_s2, %s4297_s7 }
 0x1c1   : > { %v5061_v26 = vmax.f32 %v725_v14, 0.0  ;;  %3222 = vmatmul.mubr.msk.bf16.vlgmr.msra.gmra.mxu0 %vm4987_vm3, %v1327_v20  ;;  %v6197_v5 = vsel %vm5132_vm6, 4294967295, %v6196_v5  ;;  %v5146_v9 = vmax.f32 %v730_v48, 0.0  ;;  %v5148_v10 = vmax.f32 %v733_v53, 0.0  ;;  %p4300_p11 = scmp.lt.s32.totalorder %s4298_s0, %s4292_s6 }
 0x1c2   : > { %v737_v27 = vpop.f32.mrf.mxu0  ;;  %3223 = vmatprep.mubr.msk.bf16.mxu0 %vm4991_vm4, %v5066_v28  ;;  %3594 = vmatpush3.bf16.msra.mxu0 %v4069_v19  ;;  %6198 = vst [vmem:[#allocation37_spill] sm:$0xff] %v6197_v5  ;;  %v5150_v11 = vpack.c.bf16 %v1323_v41, %v1324_v59  ;;  %v1166_v12 = vsel %vm6083_vm10, %v1144_v0, %v1145_v49  ;;  %v1299_v14 = vrot.slane %v5051_v21, 1  ;;  %vm5164_vm9 = vcmp.eq.s32.totalorder %v1135_v1, 1 }
 0x1c3   : > { %v1146_v36 = vrot.slane %v5061_v26, 7  ;;  %3595 = vmatprep.subr.bf16.mxu0 %v4070_v24  ;;  %v6199_v19 = vmov 0  ;;  %v1237_v0 = vsel %vm1221_vm2, 65537, %v6066_v2  ;;  %v3130_v22 = vcombine.low %v4909_v4, %v1390_v7  ;;  %p4301_p0 = por %p4300_p11, %p4299_p7 }
 0x1c4   : > { %v5083_v37 = vpop.f32.mrf.mxu0  ;;  %v6200_v19 = vsel %vm5164_vm9, 4294967295, %v6199_v19  ;;  %v796_v24 = vadd.s32 88, %v4887_v54  ;;  %v1298_v25 = vrot.slane %v4977_v44, 1  ;;  %v738_v29 = vadd.f32 %v4905_v63, %v737_v27 }
 0x1c5   : > { %v1165_v62 = vsel %vm6083_vm10, %v1145_v49, %v1146_v36  ;;  %v5199_v31 = vsel %vm1223_vm8, 65537, %v6066_v2  ;;  %v797_v33 = vadd.s32 96, %v4887_v54  ;;  %v1147_v42 = vrot.slane %v5146_v9, 7  ;;  %v4080_v49 = vld [vmem:[#allocation10 + $0x1d8] sm:$0xff]   ;;  %p4302_p4 = pnand %p4301_p0, %p4295_p12 }
 0x1c6   : > { %v740_v57 = vpop.f32.mrf.mxu0  ;;  %3596 = vmatpush3.bf16.msra.mxu0 %v4071_v46  ;;  %v5162_v18 = vpack.c.bf16 %v1165_v62, %v1166_v12  ;;  %v6070_v27 = vrot.slane %v5148_v10, 7  ;;  %v3123_v48 = vcombine.low %v1237_v0, %v4909_v4  ;;  %vm5213_vm11 = vcmp.ne.s16.totalorder %v3122_v6, 0  ;;  %v4086_v62 = vld [vmem:[#allocation10 + $0x1c8] sm:$0xff]  }
 0x1c7   : > { %3597 = vmatprep.subr.bf16.mxu0 %v4074_v56  ;;  %v741_v20 = vadd.f32 %v4905_v63, %v740_v57  ;;  %v1321_v56 = vsel %vm6082_vm12, %v1298_v25, %v1299_v14  ;;  %v1164_v60 = vsel %vm6083_vm10, %v1146_v36, %v1147_v42  ;;  %v882_v1 = vand.u32 15, %v796_v24  ;;  %v4081_v36 = vld [vmem:[#allocation10 + $0x198] sm:$0xff]  }
 0x1c8   : > { %v3719_v3 = vpop.f32.mrf.mxu0  ;;  %vm5235_vm13 = vcmp.ne.s16.totalorder %v3130_v22, 0  ;;  %v6203_v12 = vmov 0  ;;  %v1300_v0 = vrot.slane %v5061_v26, 1  ;;  %vm5247_vm15 = vcmp.ne.s16.totalorder %v3123_v48, 0  ;;  %v4082_v22 = vld [vmem:[#allocation10 + $0x1d0] sm:$0xff]   ;;  %v4102_v57 = vld [vmem:[#allocation10 + $0x218] sm:$0xff]  }
 0x1c9   : > { %3224 = vmatmul.mubr.msk.bf16.gmra.mxu0 %vm5116_vm1, %v5150_v11  ;;  %v762_v53 = vadd.f32 %v3719_v3, %v4905_v63  ;;  %v5219_v59 = vmax.f32 %v741_v20, 0.0  ;;  %v5227_v3 = vmax.f32 %v738_v29, 0.0  ;;  %v6204_v12 = vsel %vm5235_vm13, 4294967295, %v6203_v12 }
 0x1ca   : > { %v5160_v17 = vpop.f32.mrf.mxu0  ;;  %3225 = vmatprep.mubr.msk.bf16.mxu0 %vm5128_vm5, %v5162_v18  ;;  %3598 = vmatpush3.bf16.msra.mxu0 %v4075_v8  ;;  %v1322_v8 = vsel %vm6082_vm12, %v1297_v35, %v1298_v25  ;;  %v1163_v29 = vsel %vm6083_vm10, %v1147_v42, %v6070_v27  ;;  %v6073_v25 = vrot.slane %v5146_v9, 1  ;;  %v749_v42 = vadd.f32 %v5083_v37, %v4905_v63  ;;  %v4103_v35 = vld [vmem:[#allocation10 + $0x210] sm:$0xff]  }
 0x1cb   : > { %3599 = vmatprep.subr.bf16.mxu0 %v4076_v13  ;;  %v889_v13 = vand.u32 15, %v797_v33  ;;  %v5241_v24 = vpack.c.bf16 %v1321_v56, %v1322_v8  ;;  %v746_v56 = vadd.f32 %v5043_v15, %v4905_v63  ;;  %vm5267_vm0 = vcmp.lt.s32.totalorder %v882_v1, 15 }
 0x1cc   : > { %v3720_v30 = vpop.f32.mrf.mxu0  ;;  %v5282_v1 = vadd.s32 112, %v4887_v54  ;;  %v1319_v2 = vsel %vm6082_vm12, %v1300_v0, %v6073_v25  ;;  %v5299_v48 = vmax.f32 %v749_v42, 0.0  ;;  %v6212_v25 = vrot.slane %v5219_v59, 7 }
 0x1cd   : > { %v765_v46 = vadd.f32 %v3720_v30, %v4905_v63  ;;  %6205 = vst [vmem:[#allocation38_spill] sm:$0xff] %v5241_v24  ;;  %v5252_v30 = vmax.f32 %v762_v53, 0.0  ;;  %vm5277_vm2 = vcmp.ge.s32.totalorder %v889_v13, 1  ;;  %v1320_v13 = vsel %vm6082_vm12, %v1299_v14, %v1300_v0  ;;  %v4087_v0 = vld [vmem:[#allocation10 + $0x188] sm:$0xff]  }
 0x1ce   : > { %v5207_v55 = vpop.f32.mrf.mxu0  ;;  %3600 = vmatpush3.bf16.msra.mxu0 %v4077_v40  ;;  %v5254_v40 = vpack.c.bf16 %v1163_v29, %v1164_v60  ;;  %v1139_v60 = vrot.slane %v4944_v32, 7  ;;  %v5305_v14 = vpack.c.bf16 %v1319_v2, %v1320_v13  ;;  %v6213_v42 = vrot.slane %v5148_v10, 7 }
 0x1cf   : > { %v5229_v6 = vmax.f32 %v765_v46, 0.0  ;;  %3601 = vmatprep.subr.bf16.mxu0 %v4080_v49  ;;  %v5257_v46 = vadd.s32 104, %v4887_v54  ;;  %v1303_v13 = vrot.slane %v5227_v3, 1 }
 0x1d0   : > { %v1125_v7 = vpop.f32.mrf.mxu0 }
 0x1d1   : > { %v1126_v20 = vadd.f32 %v4905_v63, %v1125_v7  ;;  %3226 = vmatmul.mubr.msk.bf16.gmra.mxu0 %vm5132_vm6, %v5241_v24  ;;  %v1149_v7 = vrot.slane %v5227_v3, 7  ;;  %v1453_v15 = vrot.slane %v5229_v6, 1  ;;  %v6076_v41 = vrot.slane %v5229_v6, 7 }
 0x1d2   : > { %v3759_v33 = vpop.f32.mrf.mxu0  ;;  %3227 = vmatprep.mubr.msk.bf16.mxu0 %vm5213_vm11, %v5254_v40  ;;  %3602 = vmatpush3.bf16.msra.mxu0 %v4081_v36  ;;  %v6081_v36 = vrot.slane %v5252_v30, 1 }
 0x1d3   : > { %v1132_v49 = vmax.f32 %v1126_v20, 0.0  ;;  %v4083_v20 = vld [vmem:[#allocation10 + $0x190] sm:$0xff]   ;;  %3603 = vmatprep.subr.bf16.mxu0 %v4082_v22  ;;  %v1161_v61 = vsel %vm6083_vm10, %v1149_v7, %v6212_v25 }
 0x1d4   : > { %v1128_v37 = vpop.f32.mrf.mxu0 }
 0x1d5   : > { %v1137_v29 = vsel %vm5164_vm9, 0.0, %v1132_v49  ;;  %v1129_v33 = vadd.f32 %v4905_v63, %v1128_v37  ;;  %v5297_v37 = vmax.f32 %v746_v56, 0.0  ;;  %v1456_v56 = vsel %vm6082_vm12, %v6081_v36, %v1453_v15 }
 0x1d6   : > { %v1454_v47 = vrot.slane %v1137_v29, 1  ;;  %v1466_v52 = vrot.slane %v1137_v29, 7  ;;  %v3760_v27 = vpop.f32.mrf.mxu0  ;;  %3604 = vmatpush3.bf16.msra.mxu0 %v4083_v20  ;;  %v1162_v20 = vsel %vm6083_vm10, %v6213_v42, %v1149_v7  ;;  %v4088_v29 = vld [vmem:[#allocation10 + $0x1c0] sm:$0xff]   ;;  %v1152_v7 = vrot.slane %v5299_v48, 7  ;;  %v4072_v42 = vld [vmem:[#allocation10 + $0x170] sm:$0xff]  }
 0x1d7   : > { %v1133_v5 = vmax.f32 %v1129_v33, 0.0  ;;  %3605 = vmatprep.subr.bf16.mxu0 %v4086_v62  ;;  %v5330_v50 = vpack.c.bf16 %v1161_v61, %v1162_v20  ;;  %v1151_v36 = vrot.slane %v5297_v37, 7  ;;  %v757_v62 = vadd.f32 %v4905_v63, %v5207_v55 }
 0x1d8   : > { %v5311_v22 = vsel %vm6083_vm10, %v6076_v41, %v1466_v52  ;;  %v1455_v27 = vsel %vm6082_vm12, %v1453_v15, %v1454_v47  ;;  %v6214_v15 = vrot.slane %v4967_v39, 7  ;;  %v4067_v39 = vld [vmem:[#allocation10 + $0x138] sm:$0xff]  }
 0x1d9   : > { %v1138_v2 = vsel %vm5164_vm9, 0.0, %v1133_v5  ;;  %v5321_v25 = vpack.c.bf16 %v1133_v5, %v1132_v49  ;;  %v5327_v33 = vpack.c.bf16 %v1455_v27, %v1456_v56  ;;  %v1302_v49 = vrot.slane %v5148_v10, 1  ;;  %3228 = vmatmul.mubr.msk.bf16.gmra.mxu0 %vm5235_vm13, %v5305_v14 }
 0x1da   : > { %v1155_v41 = vrot.slane %v1138_v2, 7  ;;  %v1479_v24 = vrot.slane %v1138_v2, 1  ;;  %v1171_v5 = vsel %vm6083_vm10, %v1139_v60, %v6214_v15  ;;  %3229 = vmatprep.mubr.msk.bf16.mxu0 %vm5247_vm15, %v5330_v50  ;;  %3606 = vmatpush3.bf16.msra.mxu0 %v4087_v0  ;;  %v754_v56 = vadd.f32 %v4905_v63, %v5160_v17 }
 0x1db   : > { %3607 = vmatprep.subr.bf16.mxu0 %v4088_v29  ;;  %v6215_v0 = vrot.slane %v4944_v32, 1  ;;  %v1317_v63 = vsel %vm6082_vm12, %v1302_v49, %v1303_v13  ;;  %v5380_v17 = vmax.f32 %v757_v62, 0.0  ;;  %v6218_v15 = vcombine.low %v4909_v4, %v5185_v23 }
 0x1dc   : > { %v1172_v61 = vsel %vm6083_vm10, %v1155_v41, %v1139_v60  ;;  %v5351_v27 = vsel %vm6083_vm10, %v1466_v52, %v1155_v41  ;;  %v5355_v55 = vsel %vm6082_vm12, %v1454_v47, %v1479_v24  ;;  %v4089_v60 = vld [vmem:[#allocation10 + $0x180] sm:$0xff]   ;;  %v5369_v47 = vpack.c.bf16 %v4979_v45, %v4963_v38 }
 0x1dd   : > { %v1173_v2 = vpack.c.bf16 %v1171_v5, %v1172_v61  ;;  %v1469_v20 = vpack.c.bf16 %v5351_v27, %v5311_v22  ;;  %v5365_v52 = vsel %vm6082_vm12, %v1479_v24, %v6215_v0  ;;  %v6216_v38 = vrot.slane %v5219_v59, 7  ;;  %v4073_v61 = vld [vmem:[#allocation10 + $0x130] sm:$0xff]  }
 0x1de   : > { %v1482_v32 = vpack.c.bf16 %v5365_v52, %v5355_v55  ;;  %v896_v41 = vand.u32 15, %v5257_v46  ;;  %v6217_v24 = vrot.slane %v5146_v9, 1  ;;  %vm5400_vm7 = vcmp.ne.s16.totalorder %v6218_v15, 0  ;;  %3608 = vmatpush3.bf16.msra.mxu0 %v4089_v60  ;;  %v4084_v15 = vld [vmem:[#allocation10 + $0x160] sm:$0xff]   ;;  %v4108_v52 = vld [vmem:[#allocation11 + $0x28] sm:$0xff]  }
 0x1df   : > { %3213 = vmatmul.mubr.msk.bf16.vlgmr.msra.gmra.mxu1 %vm4947_vm14, %v1173_v2  ;;  %v1160_v45 = vsel %vm6083_vm10, %v6216_v38, %v1151_v36  ;;  %v6219_v5 = vmov 0  ;;  %v6221_v62 = vcombine.low %v5199_v31, %v4909_v4  ;;  %v5412_v2 = vmax.f32 %v754_v56, 0.0  ;;  %v4078_v38 = vld [vmem:[#allocation10 + $0x168] sm:$0xff]  }
 0x1e0   : > { %2114 = vmatprep.mubr.bf16.mxu1 %v5369_v47  ;;  %3530 = vmatpush3.bf16.msra.mxu1 %v4067_v39  ;;  %v1318_v29 = vsel %vm6082_vm12, %v6217_v24, %v1302_v49  ;;  %v6220_v5 = vsel %vm5400_vm7, 4294967295, %v6219_v5  ;;  %v903_v39 = vand.u32 15, %v5282_v1  ;;  %v1159_v23 = vsel %vm6083_vm10, %v1151_v36, %v1152_v7  ;;  %vm6225_vm12 = vmpackc.low %vm5267_vm0, %vm5267_vm0 }
 0x1e1   : > { %vm5407_vm8 = vcmp.ne.s16.totalorder %v6221_v62, 0  ;;  %v5414_v49 = vpack.c.bf16 %v1317_v63, %v1318_v29  ;;  %3531 = vmatprep.subr.bf16.mxu1 %v4072_v42  ;;  %v6224_v0 = vmov 0   ;;  %v1304_v1 = vrot.slane %v5219_v59, 1  ;;  %vm6226_vm10 = vmpackc.low %vm5277_vm2, %vm5277_vm2 }
 0x1e2   : > { %v1394_v31 = vsel %vm6225_vm12, 65537, %v6224_v0  ;;  %v5427_v56 = vpack.c.bf16 %v1159_v23, %v1160_v45  ;;  %v1241_v36 = vsel %vm6226_vm10, 65537, %v6224_v0  ;;  %v1154_v42 = vrot.slane %v5380_v17, 7  ;;  %v4079_v45 = vld [vmem:[#allocation10 + $0x128] sm:$0xff]   ;;  %v4085_v23 = vld [vmem:[#allocation10 + $0x120] sm:$0xff]  }
 0x1e3   : > { %3230 = vmatmul.mubr.msk.bf16.gmra.mxu0 %vm5400_vm7, %v5414_v49  ;;  %vm5439_vm12 = vcmp.lt.s32.totalorder %v896_v41, 15  ;;  %v800_v60 = vadd.s32 120, %v4887_v54  ;;  %v1305_v63 = vrot.slane %v5297_v37, 1  ;;  %v3132_v8 = vcombine.low %v4909_v4, %v1394_v31 }
 0x1e4   : > { %3231 = vmatprep.mubr.msk.bf16.mxu0 %vm5407_vm8, %v5427_v56  ;;  %3532 = vmatpush3.bf16.msra.mxu1 %v4073_v61  ;;  %vm5449_vm10 = vcmp.ge.s32.totalorder %v903_v39, 1  ;;  %v1153_v41 = vrot.slane %v5412_v2, 7  ;;  %v3125_v29 = vcombine.low %v1241_v36, %v4909_v4  ;;  %v5457_v62 = vpack.c.bf16 %v4977_v44, %v4975_v43  ;;  %vm1380_vm7 = vmpackc.low %vm5439_vm12, %vm5439_vm12  ;;  %v4090_v36 = vld [vmem:[#allocation10 + $0x158] sm:$0xff]  }
 0x1e5   : > { %3533 = vmatprep.subr.bf16.mxu1 %v4078_v38  ;;  %vm6231_vm0 = vcmp.lt.s32.totalorder %v4887_v54, 7  ;;  %vm6233_vm13 = vcmp.lt.s32.totalorder %v4887_v54, 1  ;;  %v910_v44 = vand.u32 15, %v800_v60  ;;  %vm5477_vm9 = vcmp.ne.s16.totalorder %v3132_v8, 0 }
 0x1e6   : > { %v1315_v61 = vsel %vm6231_vm0, %v1304_v1, %v1305_v63  ;;  %vm6232_vm2 = vmmov %vm6231_vm0  ;;  %v1157_v43 = vsel %vm6233_vm13, %v1153_v41, %v1154_v42  ;;  %v1307_v53 = vrot.slane %v5412_v2, 1  ;;  %v1290_v54 = vpack.c.bf16 %v5219_v59, %v5227_v3  ;;  %v4100_v59 = vld [vmem:[#allocation10 + $0x228] sm:$0xff]  }
 0x1e7   : > { %v1316_v39 = vsel %vm6232_vm2, %v1303_v13, %v1304_v1  ;;  %3214 = vmatmul.mubr.msk.bf16.gmra.mxu1 %vm4991_vm4, %v5045_v16  ;;  %vm1227_vm0 = vmpackc.low %vm5449_vm10, %vm5449_vm10  ;;  %v6234_v13 = vmov 0  ;;  %v1396_v1 = vsel %vm1380_vm7, 65537, %v6224_v0  ;;  %vm5499_vm10 = vcmp.lt.s32.totalorder %v910_v44, 15 }
 0x1e8   : > { %2122 = vmatprep.mubr.bf16.mxu1 %v5457_v62  ;;  %v6235_v13 = vsel %vm5477_vm9, 4294967295, %v6234_v13  ;;  %3534 = vmatpush3.bf16.msra.mxu1 %v4079_v45  ;;  %v5481_v31 = vpack.c.bf16 %v1315_v61, %v1316_v39  ;;  %vm6236_vm12 = vmmov %vm6233_vm13  ;;  %vm5487_vm13 = vcmp.ne.s16.totalorder %v3125_v29, 0  ;;  %v1243_v8 = vsel %vm1227_vm0, 65537, %v6224_v0  ;;  %v4092_v61 = vld [vmem:[#allocation10 + $0x150] sm:$0xff]  }
 0x1e9   : > { %v1158_v16 = vsel %vm6236_vm12, %v1152_v7, %v1153_v41  ;;  %3535 = vmatprep.subr.bf16.mxu1 %v4084_v15  ;;  %v1306_v45 = vrot.slane %v5299_v48, 1  ;;  %v3133_v24 = vcombine.low %v4909_v4, %v1396_v1  ;;  %v4091_v41 = vld [vmem:[#allocation10 + $0x118] sm:$0xff]   ;;  %v1439_v29 = vrot.slane %v5252_v30, 7  ;;  %vm6241_vm7 = vmmov %vm6232_vm2 }
 0x1ea   : > { %v5493_v60 = vpack.c.bf16 %v1157_v43, %v1158_v16  ;;  %v3126_v15 = vcombine.low %v1243_v8, %v4909_v4  ;;  %v5512_v39 = vpack.c.bf16 %v5061_v26, %v5051_v21  ;;  %vm1382_vm2 = vmpackc.low %vm5499_vm10, %vm5499_vm10  ;;  %v1308_v7 = vrot.slane %v5380_v17, 1 }
 0x1eb   : > { %3232 = vmatmul.mubr.msk.bf16.gmra.mxu0 %vm5477_vm9, %v5481_v31  ;;  %v1313_v43 = vsel %vm6241_vm7, %v1306_v45, %v1307_v53  ;;  %vm6242_vm0 = vmmov %vm6236_vm12  ;;  %vm5527_vm9 = vcmp.ne.s16.totalorder %v3133_v24, 0  ;;  %v1398_v8 = vsel %vm1382_vm2, 65537, %v6224_v0  ;;  %v4096_v0 = vld [vmem:[#allocation10 + $0x140] sm:$0xff]   ;;  %v1292_v34 = vpack.c.bf16 %v5380_v17, %v5412_v2 }
 0x1ec   : > { %3233 = vmatprep.mubr.msk.bf16.mxu0 %vm5487_vm13, %v5493_v60  ;;  %3536 = vmatpush3.bf16.msra.mxu1 %v4085_v23  ;;  %v1442_v44 = vsel %vm6242_vm0, %v1154_v42, %v1439_v29  ;;  %vm6243_vm12 = vmmov %vm6241_vm7  ;;  %v4093_v23 = vld [vmem:[#allocation10 + $0x110] sm:$0xff]   ;;  %vm5533_vm10 = vcmp.ne.s16.totalorder %v3126_v15, 0  ;;  %v3134_v24 = vcombine.low %v4909_v4, %v1398_v8  ;;  %v6250_v15 = vrot.slane %v5252_v30, 1 }
 0x1ed   : > { %3537 = vmatprep.subr.bf16.mxu1 %v4090_v36  ;;  %v1314_v21 = vsel %vm6243_vm12, %v1305_v63, %v1306_v45  ;;  %v6248_v36 = vrot.slane %v5229_v6, 7  ;;  %vm6249_vm7 = vmmov %vm6242_vm0  ;;  %v4094_v63 = vld [vmem:[#allocation10 + $0x148] sm:$0xff]   ;;  %v1452_v3 = vpack.c.bf16 %v5229_v6, %v5252_v30 }
 0x1ee   : > { %v5531_v16 = vpack.c.bf16 %v1313_v43, %v1314_v21  ;;  %vm6251_vm2 = vmmov %vm6243_vm12  ;;  %vm5566_vm12 = vcmp.ne.s16.totalorder %v3134_v24, 0  ;;  %v4104_v6 = vld [vmem:[#allocation10 + $0x208] sm:$0xff]   ;;  %v4110_v21 = vld [vmem:[#allocation11 + $0x18] sm:$0xff]  }
 0x1ef   : > { %3215 = vmatmul.mubr.msk.bf16.gmra.mxu1 %vm5128_vm5, %v5066_v28  ;;  %v1441_v42 = vsel %vm6249_vm7, %v1439_v29, %v6248_v36  ;;  %v5554_v29 = vpack.c.bf16 %v5148_v10, %v5146_v9  ;;  %vm6252_vm0 = vmmov %vm6251_vm2  ;;  %v4097_v9 = vld [vmem:[#allocation10 + $0x100] sm:$0xff]  }
 0x1f0   : > { %2130 = vmatprep.mubr.bf16.mxu1 %v5512_v39  ;;  %3538 = vmatpush3.bf16.msra.mxu1 %v4091_v41  ;;  %v5543_v45 = vpack.c.bf16 %v1441_v42, %v1442_v44  ;;  %v4095_v41 = vld [vmem:[#allocation10 + $0x108] sm:$0xff]   ;;  %v1312_v43 = vsel %vm6252_vm0, %v1307_v53, %v1308_v7  ;;  %v4098_v44 = vld [vmem:[#allocation10 + $0x238] sm:$0xff]   ;;  %v1291_v53 = vpack.c.bf16 %v5299_v48, %v5297_v37 }
 0x1f1   : > { %3539 = vmatprep.subr.bf16.mxu1 %v4092_v61  ;;  %v1311_v61 = vsel %vm6251_vm2, %v1308_v7, %v6250_v15  ;;  %v4111_v7 = vld [vmem:[#allocation11 + $0x10] sm:$0xff]  }
 0x1f2   : > { %v5570_v10 = vpack.c.bf16 %v1311_v61, %v1312_v43 }
 0x1f3   : > { %3234 = vmatmul.mubr.msk.bf16.gmra.mxu0 %vm5527_vm9, %v5531_v16 }
 0x1f4   : > { %3235 = vmatprep.mubr.msk.bf16.mxu0 %vm5533_vm10, %v5543_v45  ;;  %3540 = vmatpush3.bf16.msra.mxu1 %v4093_v23  ;;  %v5694_v23 = vld [vmem:[%s6263_s24] ss:$0 sm:$0xff] }
 0x1f5   : > { %3541 = vmatprep.subr.bf16.mxu1 %v4094_v63 }
 0x1f7   : > { %3216 = vmatmul.mubr.msk.bf16.gmra.mxu1 %vm5213_vm11, %v5162_v18 }
 0x1f8   : > { %2138 = vmatprep.mubr.bf16.mxu1 %v5554_v29  ;;  %3542 = vmatpush3.bf16.msra.mxu1 %v4095_v41 }
 0x1f9   : > { %3543 = vmatprep.subr.bf16.mxu1 %v4096_v0 }
 0x1fb   : > { %3236 = vmatmul.mubr.msk.bf16.gmra.mxu0 %vm5566_vm12, %v5570_v10 }
 0x1fc   : > { %2397 = vmatprep.mubr.bf16.mxu0 %v5457_v62  ;;  %3544 = vmatpush3.bf16.msra.mxu1 %v4097_v9 }
 0x1fd   : > { %3761 = vmatprep.subr.bf16.mxu1 %v4098_v44 }
 0x1ff   : > { %3217 = vmatmul.mubr.msk.bf16.gmra.mxu1 %vm5247_vm15, %v5254_v40 }
 0x200   : > { %2146 = vmatprep.mubr.bf16.mxu1 %v1290_v54 }
 0x203   : > { %3245 = vmatmul.mubr.msk.bf16.vlgmr.msra.gmra.mxu0 %vm4947_vm14, %v5066_v28  ;;  %v4099_v28 = vld [vmem:[#allocation10 + $0x230] sm:$0xff]   ;;  %vm6259_vm14 = vnez %v6200_v19  ;;  %v4105_v19 = vld [vmem:[#allocation10 + $0x200] sm:$0xff]  }
 0x204   : > { %2405 = vmatprep.mubr.bf16.mxu0 %v5512_v39 }
 0x207   : > { %3218 = vmatmul.mubr.msk.bf16.gmra.mxu1 %vm5407_vm8, %v5330_v50 }
 0x208   : > { %2154 = vmatprep.mubr.bf16.mxu1 %v1291_v53 }
 0x20b   : > { %3246 = vmatmul.mubr.msk.bf16.gmra.mxu0 %vm4991_vm4, %v5162_v18  ;;  %v6256_v18 = vld [vmem:[#allocation38_spill] sm:$0xff]  ;;  %vm3252_vm4 = vmneg %vm6259_vm14 }
 0x20c   : > { %2413 = vmatprep.mubr.bf16.mxu0 %v5554_v29 }
 0x20f   : > { %3219 = vmatmul.mubr.msk.bf16.gmra.mxu1 %vm5487_vm13, %v5427_v56 }
 0x210   : > { %2162 = vmatprep.mubr.bf16.mxu1 %v1292_v34 }
 0x213   : > { %3247 = vmatmul.mubr.msk.bf16.gmra.mxu0 %vm5128_vm5, %v5254_v40  ;;  %vm6260_vm5 = vnez %v6204_v12  ;;  %v4106_v12 = vld [vmem:[#allocation11 + $0x38] sm:$0xff]  }
 0x214   : > { %2421 = vmatprep.mubr.bf16.mxu0 %v1290_v54  ;;  %3793 = vmatprep.subr.bf16.mxu0 %v4106_v12 }
 0x215   : > { %3794 = vmatpush3.bf16.msra.mxu0 %v4106_v12 }
 0x217   : > { %3220 = vmatmul.mubr.msk.bf16.gmra.mxu1 %vm5533_vm10, %v5493_v60 }
 0x218   : > { %3237 = vmatprep.mubr.msk.bf16.mxu1 %vm4987_vm3, %v5150_v11  ;;  %v4101_v11 = vld [vmem:[#allocation10 + $0x220] sm:$0xff]  }
 0x21b   : > { %3248 = vmatmul.mubr.msk.bf16.gmra.mxu0 %vm5213_vm11, %v5330_v50  ;;  %vm3254_vm11 = vmpackc.low %vm3252_vm4, %vm3252_vm4 }
 0x21c   : > { %2429 = vmatprep.mubr.bf16.mxu0 %v1291_v53 }
 0x21f   : > { %2301 = vmatmul.mubr.bf16.vlgmr.msra.gmra.mxu1 %v5369_v47 }
 0x220   : > { %3238 = vmatprep.mubr.msk.bf16.mxu1 %vm5116_vm1, %v6256_v18  ;;  %3762 = vmatpush3.bf16.msra.mxu1 %v4098_v44 }
 0x221   : > { %3763 = vmatprep.subr.bf16.mxu1 %v4099_v28 }
 0x223   : > { %3249 = vmatmul.mubr.msk.bf16.gmra.mxu0 %vm5247_vm15, %v5427_v56  ;;  %vm6261_vm15 = vnez %v6220_v5 }
 0x224   : > { %2437 = vmatprep.mubr.bf16.mxu0 %v1292_v34  ;;  %3764 = vmatpush3.bf16.msra.mxu1 %v4099_v28 }
 0x225   : > { %3765 = vmatprep.subr.bf16.mxu1 %v4100_v59 }
 0x227   : > { %2309 = vmatmul.mubr.bf16.gmra.mxu1 %v5457_v62 }
 0x228   : > { %3239 = vmatprep.mubr.msk.bf16.mxu1 %vm5132_vm6, %v5305_v14  ;;  %3766 = vmatpush3.bf16.msra.mxu1 %v4100_v59 }
 0x229   : > { %3767 = vmatprep.subr.bf16.mxu1 %v4101_v11 }
 0x22b   : > { %3250 = vmatmul.mubr.msk.bf16.gmra.mxu0 %vm5407_vm8, %v5493_v60  ;;  %vm6262_vm8 = vnez %v6235_v13 }
 0x22c   : > { %2445 = vmatprep.mubr.bf16.mxu0 %v1452_v3  ;;  %3768 = vmatpush3.bf16.msra.mxu1 %v4101_v11 }
 0x22d   : > { %3769 = vmatprep.subr.bf16.mxu1 %v4102_v57 }
 0x22f   : > { %2317 = vmatmul.mubr.bf16.gmra.mxu1 %v5512_v39 }
 0x230   : > { %3240 = vmatprep.mubr.msk.bf16.mxu1 %vm6260_vm5, %v5414_v49  ;;  %3770 = vmatpush3.bf16.msra.mxu1 %v4102_v57 }
 0x231   : > { %3771 = vmatprep.subr.bf16.mxu1 %v4103_v35 }
 0x233   : > { %3251 = vmatmul.mubr.msk.bf16.gmra.mxu0 %vm5487_vm13, %v5543_v45 }
 0x234   : > { %3256 = vmatprep.mubr.msk.bf16.mxu0 %vm3254_vm11, %v5321_v25  ;;  %3772 = vmatpush3.bf16.msra.mxu1 %v4103_v35 }
 0x235   : > { %3773 = vmatprep.subr.bf16.mxu1 %v4104_v6 }
 0x237   : > { %2325 = vmatmul.mubr.bf16.gmra.mxu1 %v5554_v29 }
 0x238   : > { %3241 = vmatprep.mubr.msk.bf16.mxu1 %vm6261_vm15, %v5481_v31  ;;  %3774 = vmatpush3.bf16.msra.mxu1 %v4104_v6 }
 0x239   : > { %3775 = vmatprep.subr.bf16.mxu1 %v4105_v19 }
 0x23b   : > { %3257 = vmatmul.mubr.msk.bf16.gmra.mxu0 %vm5533_vm10, %v1469_v20 }
 0x23c   : > { %3776 = vmatpush3.bf16.msra.mxu1 %v4105_v19 }
 0x23d   : > { %3825 = vmatprep.subr.bf16.mxu1 %v4106_v12 }
 0x23f   : > { %2333 = vmatmul.mubr.bf16.gmra.mxu1 %v1290_v54 }
 0x240   : > { %3242 = vmatprep.mubr.msk.bf16.mxu1 %vm6262_vm8, %v5531_v16 }
 0x247   : > { %2341 = vmatmul.mubr.bf16.gmra.mxu1 %v1291_v53  ;;  %v4112_v53 = vld [vmem:[#allocation11 + $0x8] sm:$0xff]  }
 0x248   : > { %3243 = vmatprep.mubr.msk.bf16.mxu1 %vm5527_vm9, %v5570_v10 }
 0x24f   : > { %2349 = vmatmul.mubr.bf16.gmra.mxu1 %v1292_v34 }
 0x250   : > { %3244 = vmatprep.mubr.msk.bf16.mxu1 %vm5566_vm12, %v5327_v33 }
 0x257   : > { %2357 = vmatmul.mubr.bf16.gmra.mxu1 %v1452_v3 }
 0x258   : > { %3777 = vmatprep.mubr.msk.bf16.mxu1 %vm4987_vm3, %v6256_v18  ;;  %v4113_v18 = vld [vmem:[#allocation11] sm:$0xff]  }
 0x25f   : > { %3778 = vmatmul.mubr.msk.bf16.vlgmr.msra.gmra.mxu1 %vm5116_vm1, %v5305_v14  ;;  %v4107_v14 = vld [vmem:[#allocation11 + $0x30] sm:$0xff]  }
 0x260   : > { %3781 = vmatprep.mubr.msk.bf16.mxu1 %vm5132_vm6, %v5414_v49  ;;  %3833 = vmatpush3.bf16.msra.mxu1 %v4106_v12  ;;  %v4109_v49 = vld [vmem:[#allocation11 + $0x20] sm:$0xff]  }
 0x261   : > { %3795 = vmatprep.subr.bf16.mxu0 %v4107_v14  ;;  %3826 = vmatprep.subr.bf16.mxu1 %v4107_v14 }
 0x262   : > { %3796 = vmatpush3.bf16.msra.mxu0 %v4107_v14 }
 0x263   : > { %3797 = vmatprep.subr.bf16.mxu0 %v4108_v52 }
 0x264   : > { %3834 = vmatpush3.bf16.msra.mxu1 %v4107_v14 }
 0x265   : > { %3827 = vmatprep.subr.bf16.mxu1 %v4108_v52 }
 0x266   : > { %3798 = vmatpush3.bf16.msra.mxu0 %v4108_v52 }
 0x267   : > { %3782 = vmatmul.mubr.msk.bf16.gmra.mxu1 %vm6260_vm5, %v5481_v31  ;;  %3799 = vmatprep.subr.bf16.mxu0 %v4109_v49 }
 0x268   : > { %3785 = vmatprep.mubr.msk.bf16.mxu1 %vm6261_vm15, %v5531_v16  ;;  %3835 = vmatpush3.bf16.msra.mxu1 %v4108_v52 }
 0x269   : > { %3828 = vmatprep.subr.bf16.mxu1 %v4109_v49 }
 0x26a   : > { %3800 = vmatpush3.bf16.msra.mxu0 %v4109_v49 }
 0x26b   : > { %3801 = vmatprep.subr.bf16.mxu0 %v4110_v21 }
 0x26c   : > { %3836 = vmatpush3.bf16.msra.mxu1 %v4109_v49 }
 0x26d   : > { %3829 = vmatprep.subr.bf16.mxu1 %v4110_v21 }
 0x26e   : > { %3802 = vmatpush3.bf16.msra.mxu0 %v4110_v21 }
 0x26f   : > { %3786 = vmatmul.mubr.msk.bf16.gmra.mxu1 %vm6262_vm8, %v5570_v10  ;;  %3803 = vmatprep.subr.bf16.mxu0 %v4111_v7 }
 0x270   : > { %3789 = vmatprep.mubr.msk.bf16.mxu1 %vm5527_vm9, %v5327_v33  ;;  %3837 = vmatpush3.bf16.msra.mxu1 %v4110_v21 }
 0x271   : > { %3830 = vmatprep.subr.bf16.mxu1 %v4111_v7 }
 0x272   : > { %3804 = vmatpush3.bf16.msra.mxu0 %v4111_v7 }
 0x273   : > { %3805 = vmatprep.subr.bf16.mxu0 %v4112_v53 }
 0x274   : > { %3838 = vmatpush3.bf16.msra.mxu1 %v4111_v7 }
 0x275   : > { %3831 = vmatprep.subr.bf16.mxu1 %v4112_v53 }
 0x276   : > { %3806 = vmatpush3.bf16.msra.mxu0 %v4112_v53 }
 0x277   : > { %3790 = vmatmul.mubr.msk.bf16.gmra.mxu1 %vm5566_vm12, %v1482_v32  ;;  %3807 = vmatprep.subr.bf16.mxu0 %v4113_v18 }
 0x278   : > { %3839 = vmatpush3.bf16.msra.mxu1 %v4112_v53 }
 0x279   : > { %3832 = vmatprep.subr.bf16.mxu1 %v4113_v18 }
 0x27a   : > { %3808 = vmatpush3.bf16.msra.mxu0 %v4113_v18 }
 0x27c   : > { %3840 = vmatpush3.bf16.msra.mxu1 %v4113_v18 }
 0x281   : > { %v3481_v30 = vpop.f32.mrf.mxu0 }
 0x283   : > { %v3482_v40 = vpop.f32.mrf.mxu0 }
 0x284   : > { %v3483_v48 = vadd.f32 %v3482_v40, %v3481_v30 }
 0x285   : > { %v3484_v37 = vpop.f32.mrf.mxu0 }
 0x287   : > { %v3485_v22 = vpop.f32.mrf.mxu0 }
 0x288   : > { %v3486_v25 = vadd.f32 %v3485_v22, %v3484_v37 }
 0x289   : > { %v3487_v33 = vpop.f32.mrf.mxu0 }
 0x28b   : > { %v3488_v27 = vpop.f32.mrf.mxu0 }
 0x28c   : > { %v5681_v55 = vadd.f32 %v3488_v27, %v3487_v33 }
 0x28d   : > { %v3490_v20 = vpop.f32.mrf.mxu0 }
 0x28f   : > { %v3491_v47 = vpop.f32.mrf.mxu0 }
 0x290   : > { %v5683_v32 = vadd.f32 %v3491_v47, %v3490_v20 }
 0x291   : > { %v3493_v17 = vpop.f32.mrf.mxu0 }
 0x293   : > { %v3494_v5 = vpop.f32.mrf.mxu0 }
 0x294   : > { %v5685_v46 = vadd.f32 %v3494_v5, %v3493_v17 }
 0x295   : > { %v3496_v2 = vpop.f32.mrf.mxu0 }
 0x297   : > { %v3497_v56 = vpop.f32.mrf.mxu0 }
 0x298   : > { %v5687_v62 = vadd.f32 %v3497_v56, %v3496_v2 }
 0x299   : > { %v3499_v13 = vpop.f32.mrf.mxu0 }
 0x29b   : > { %v3500_v31 = vpop.f32.mrf.mxu0 }
 0x29c   : > { %v5689_v38 = vadd.f32 %v3500_v31, %v3499_v13 }
 0x29d   : > { %v3502_v60 = vpop.f32.mrf.mxu0 }
 0x29f   : > { %v3417_v39 = vpop.f32.mrf.mxu1  ;;  %v3503_v26 = vpop.f32.mrf.mxu0 }
 0x2a0   : > { %v5696_v1 = vadd.f32 %v3503_v26, %v3502_v60 }
 0x2a1   : > { %v3418_v16 = vpop.f32.mrf.mxu1 }
 0x2a2   : > { %v3419_v36 = vadd.f32 %v3418_v16, %v3417_v39 }
 0x2a3   : > { %v3505_v42 = vpop.f32.mrf.mxu0  ;;  %v3420_v8 = vpop.f32.mrf.mxu1 }
 0x2a4   : > { %v2109_v63 = vadd.f32 %v3419_v36, %v5694_v23 }
 0x2a5   : > { %v3506_v45 = vpop.f32.mrf.mxu0  ;;  %v3421_v24 = vpop.f32.mrf.mxu1 }
 0x2a6   : > { %v5699_v41 = vadd.f32 %v3506_v45, %v3505_v42  ;;  %v3422_v0 = vadd.f32 %v3421_v24, %v3420_v8  ;;  %v5701_v29 = vadd.f32 %v3483_v48, %v2109_v63 }
 0x2a7   : > { %v3508_v15 = vpop.f32.mrf.mxu0  ;;  %v3423_v61 = vpop.f32.mrf.mxu1 }
 0x2a8   : > { %v2112_v43 = vadd.f32 %v3422_v0, %v5694_v23 }
 0x2a9   : > { %v3509_v4 = vpop.f32.mrf.mxu0  ;;  %v3424_v9 = vpop.f32.mrf.mxu1 }
 0x2aa   : > { %v5704_v10 = vadd.f32 %v3509_v4, %v3508_v15  ;;  %v3425_v44 = vadd.f32 %v3424_v9, %v3423_v61  ;;  %v5706_v54 = vadd.f32 %v3486_v25, %v2112_v43 }
 0x2ab   : > { %v3511_v34 = vpop.f32.mrf.mxu0  ;;  %v3426_v51 = vpop.f32.mrf.mxu1 }
 0x2ac   : > { %v2117_v28 = vadd.f32 %v3425_v44, %v5694_v23 }
 0x2ad   : > { %v3512_v58 = vpop.f32.mrf.mxu0  ;;  %v3427_v59 = vpop.f32.mrf.mxu1 }
 0x2ae   : > { %v5709_v11 = vadd.f32 %v3512_v58, %v3511_v34  ;;  %v3428_v50 = vadd.f32 %v3427_v59, %v3426_v51  ;;  %v5712_v57 = vadd.f32 %v5681_v55, %v2117_v28 }
 0x2af   : > { %v3514_v3 = vpop.f32.mrf.mxu0  ;;  %v3429_v35 = vpop.f32.mrf.mxu1 }
 0x2b0   : > { %v2120_v6 = vadd.f32 %v3428_v50, %v5694_v23 }
 0x2b1   : > { %v3515_v19 = vpop.f32.mrf.mxu0  ;;  %v3430_v12 = vpop.f32.mrf.mxu1 }
 0x2b2   : > { %v3516_v30 = vadd.f32 %v3515_v19, %v3514_v3  ;;  %v3431_v40 = vadd.f32 %v3430_v12, %v3429_v35  ;;  %v5716_v48 = vadd.f32 %v5683_v32, %v2120_v6 }
 0x2b3   : > { %v3517_v37 = vpop.f32.mrf.mxu0  ;;  %v3432_v14 = vpop.f32.mrf.mxu1 }
 0x2b4   : > { %v2125_v22 = vadd.f32 %v3431_v40, %v5694_v23 }
 0x2b5   : > { %v3518_v25 = vpop.f32.mrf.mxu0  ;;  %v3433_v33 = vpop.f32.mrf.mxu1 }
 0x2b6   : > { %v3519_v27 = vadd.f32 %v3518_v25, %v3517_v37  ;;  %v3434_v55 = vadd.f32 %v3433_v33, %v3432_v14  ;;  %v5720_v20 = vadd.f32 %v5685_v46, %v2125_v22 }
 0x2b7   : > { %v3520_v52 = vpop.f32.mrf.mxu0  ;;  %v3435_v47 = vpop.f32.mrf.mxu1 }
 0x2b8   : > { %v2128_v17 = vadd.f32 %v3434_v55, %v5694_v23 }
 0x2b9   : > { %v3521_v5 = vpop.f32.mrf.mxu0  ;;  %v3436_v2 = vpop.f32.mrf.mxu1 }
 0x2ba   : > { %v3522_v49 = vadd.f32 %v3521_v5, %v3520_v52  ;;  %v3437_v32 = vadd.f32 %v3436_v2, %v3435_v47  ;;  %v5724_v56 = vadd.f32 %v5687_v62, %v2128_v17 }
 0x2bb   : > { %v3523_v13 = vpop.f32.mrf.mxu0  ;;  %v3438_v31 = vpop.f32.mrf.mxu1 }
 0x2bc   : > { %v2133_v60 = vadd.f32 %v3437_v32, %v5694_v23 }
 0x2bd   : > { %v3524_v39 = vpop.f32.mrf.mxu0  ;;  %v3439_v21 = vpop.f32.mrf.mxu1 }
 0x2be   : > { %v3525_v26 = vadd.f32 %v3524_v39, %v3523_v13  ;;  %v3440_v46 = vadd.f32 %v3439_v21, %v3438_v31  ;;  %v5728_v16 = vadd.f32 %v5689_v38, %v2133_v60 }
 0x2bf   : > { %v5730_v36 = vpop.f32.mrf.mxu0  ;;  %v3441_v42 = vpop.f32.mrf.mxu1 }
 0x2c0   : > { %6264 = vst [vmem:[#allocation35_spill] sm:$0xff] %v5730_v36  ;;  %v2136_v8 = vadd.f32 %v3440_v46, %v5694_v23 }
 0x2c1   : > { %v5733_v63 = vpop.f32.mrf.mxu0  ;;  %v3442_v62 = vpop.f32.mrf.mxu1 }
 0x2c2   : > { %6265 = vst [vmem:[#allocation38_spill] sm:$0xff] %v5733_v63  ;;  %v3443_v7 = vadd.f32 %v3442_v62, %v3441_v42  ;;  %v5736_v45 = vadd.f32 %v5696_v1, %v2136_v8 }
 0x2c3   : > { %v5738_v24 = vpop.f32.mrf.mxu0  ;;  %v3444_v0 = vpop.f32.mrf.mxu1 }
 0x2c4   : > { %v2141_v15 = vadd.f32 %v3443_v7, %v5694_v23 }
 0x2c5   : > { %v5741_v61 = vpop.f32.mrf.mxu0  ;;  %v3445_v38 = vpop.f32.mrf.mxu1 }
 0x2c6   : > { %v3446_v43 = vadd.f32 %v3445_v38, %v3444_v0  ;;  %v5744_v4 = vadd.f32 %v5699_v41, %v2141_v15 }
 0x2c7   : > { %v5746_v9 = vpop.f32.mrf.mxu0  ;;  %v3447_v44 = vpop.f32.mrf.mxu1 }
 0x2c8   : > { %v2144_v53 = vadd.f32 %v3446_v43, %v5694_v23 }
 0x2c9   : > { %v5749_v34 = vpop.f32.mrf.mxu0  ;;  %v3448_v1 = vpop.f32.mrf.mxu1 }
 0x2ca   : > { %v3449_v51 = vadd.f32 %v3448_v1, %v3447_v44  ;;  %v5752_v28 = vadd.f32 %v5704_v10, %v2144_v53 }
 0x2cb   : > { %v5754_v18 = vpop.f32.mrf.mxu0  ;;  %v3450_v58 = vpop.f32.mrf.mxu1 }
 0x2cc   : > { %6266 = vst [vmem:[#allocation36_spill] sm:$0xff] %v5752_v28  ;;  %v2149_v59 = vadd.f32 %v3449_v51, %v5694_v23 }
 0x2cd   : > { %v5757_v50 = vpop.f32.mrf.mxu0  ;;  %v3451_v41 = vpop.f32.mrf.mxu1 }
 0x2ce   : > { %v3452_v3 = vadd.f32 %v3451_v41, %v3450_v58  ;;  %v5760_v35 = vadd.f32 %v5709_v11, %v2149_v59 }
 0x2cf   : > { %v3453_v6 = vpop.f32.mrf.mxu1  ;;  %v5763_v12 = vpop.f32.mrf.mxu0 }
 0x2d0   : > { %v2152_v19 = vadd.f32 %v3452_v3, %v5694_v23 }
 0x2d1   : > { %v3454_v40 = vpop.f32.mrf.mxu1  ;;  %v5767_v22 = vpop.f32.mrf.mxu0 }
 0x2d2   : > { %v3455_v10 = vadd.f32 %v3454_v40, %v3453_v6  ;;  %v5765_v37 = vadd.f32 %v3516_v30, %v2152_v19 }
 0x2d3   : > { %v3456_v14 = vpop.f32.mrf.mxu1  ;;  %v5772_v47 = vpop.f32.mrf.mxu0 }
 0x2d4   : > { %6267 = vst [vmem:[#allocation37_spill] sm:$0xff] %v5765_v37  ;;  %v2157_v25 = vadd.f32 %v3455_v10, %v5694_v23 }
 0x2d5   : > { %v3457_v33 = vpop.f32.mrf.mxu1  ;;  %v5777_v13 = vpop.f32.mrf.mxu0 }
 0x2d6   : > { %v3458_v55 = vadd.f32 %v3457_v33, %v3456_v14  ;;  %v5770_v52 = vadd.f32 %v3519_v27, %v2157_v25 }
 0x2d7   : > { %v3459_v11 = vpop.f32.mrf.mxu1  ;;  %v5784_v46 = vpop.f32.mrf.mxu0 }
 0x2d8   : > { %6268 = vst [vmem:[#allocation39_spill] sm:$0xff] %v5770_v52  ;;  %v2160_v17 = vadd.f32 %v3458_v55, %v5694_v23 }
 0x2d9   : > { %v3460_v5 = vpop.f32.mrf.mxu1  ;;  %v5786_v7 = vpop.f32.mrf.mxu0 }
 0x2da   : > { %v3461_v2 = vadd.f32 %v3460_v5, %v3459_v11  ;;  %v5775_v32 = vadd.f32 %v3522_v49, %v2160_v17 }
 0x2db   : > { %v3462_v30 = vpop.f32.mrf.mxu1  ;;  %v5789_v38 = vpop.f32.mrf.mxu0 }
 0x2dc   : > { %6269 = vst [vmem:[#allocation40_spill] sm:$0xff] %v5775_v32  ;;  %v2165_v31 = vadd.f32 %v3461_v2, %v5694_v23 }
 0x2dd   : > { %v3463_v60 = vpop.f32.mrf.mxu1  ;;  %v5791_v53 = vpop.f32.mrf.mxu0 }
 0x2de   : > { %v5780_v39 = vadd.f32 %v3463_v60, %v3462_v30  ;;  %v5782_v21 = vadd.f32 %v3525_v26, %v2165_v31 }
 0x2df   : > { %v3545_v27 = vpop.f32.mrf.mxu1  ;;  %v5793_v51 = vpop.f32.mrf.mxu0 }
 0x2e0   : > { %6270 = vst [vmem:[#allocation41_spill] sm:$0xff] %v5782_v21 }
 0x2e1   : > { %v3546_v42 = vpop.f32.mrf.mxu1  ;;  %v5795_v41 = vpop.f32.mrf.mxu0 }
 0x2e2   : > { %v3547_v8 = vadd.f32 %v3546_v42, %v3545_v27 }
 0x2e3   : > { %v3548_v62 = vpop.f32.mrf.mxu1  ;;  %v5797_v19 = vpop.f32.mrf.mxu0 }
 0x2e4   : > { %v2303_v49 = vadd.f32 %v3547_v8, %v5701_v29  ;;  %6271 = vst [vmem:[#allocation42_spill] sm:$0xff] %v5797_v19 }
 0x2e5   : > { %v3549_v0 = vpop.f32.mrf.mxu1  ;;  %v5799_v10 = vpop.f32.mrf.mxu0 }
 0x2e6   : > { %6272 = vst [vmem:[#allocation43_spill] sm:$0xff] %v5799_v10 }
 0x2e7   : > { %v3551_v15 = vpop.f32.mrf.mxu1  ;;  %v5803_v33 = vpop.f32.mrf.mxu0 }
 0x2e8   : > { %6273 = vst [vmem:[#allocation44_spill] sm:$0xff] %v5803_v33 }
 0x2e9   : > { %v3552_v43 = vpop.f32.mrf.mxu1  ;;  %v5809_v17 = vpop.f32.mrf.mxu0 }
 0x2ea   : > { %6274 = vst [vmem:[#allocation45_spill] sm:$0xff] %v5809_v17  ;;  %v3553_v36 = vadd.f32 %v3552_v43, %v3551_v15  ;;  %v3611_v15 = vadd.f32 %v5741_v61, %v5738_v24 }
 0x2eb   : > { %v3554_v44 = vpop.f32.mrf.mxu1  ;;  %v5813_v30 = vpop.f32.mrf.mxu0 }
 0x2ed   : > { %v3555_v26 = vpop.f32.mrf.mxu1  ;;  %v5817_v27 = vpop.f32.mrf.mxu0 }
 0x2ee   : > { %v3556_v19 = vadd.f32 %v3555_v26, %v3554_v44  ;;  %v3620_v44 = vadd.f32 %v5767_v22, %v5763_v12  ;;  %v3614_v26 = vadd.f32 %v5749_v34, %v5746_v9 }
 0x2ef   : > { %v3557_v1 = vpop.f32.mrf.mxu1  ;;  %v5821_v32 = vpop.f32.mrf.mxu0 }
 0x2f0   : > { %6276 = vst [vmem:[#allocation47_spill] sm:$0xff] %v5821_v32  ;;  %v2311_v32 = vadd.f32 %v3553_v36, %v5712_v57 }
 0x2f1   : > { %v3558_v58 = vpop.f32.mrf.mxu1  ;;  %v5827_v17 = vpop.f32.mrf.mxu0 }
 0x2f3   : > { %v3560_v59 = vpop.f32.mrf.mxu1  ;;  %v5833_v28 = vpop.f32.mrf.mxu0 }
 0x2f4   : > { %6281 = vst [vmem:[#allocation52_spill] sm:$0xff] %v5833_v28 }
 0x2f5   : > { %v3561_v3 = vpop.f32.mrf.mxu1 }
 0x2f6   : > { %v3562_v24 = vadd.f32 %v3561_v3, %v3560_v59  ;;  %v3623_v59 = vadd.f32 %v5777_v13, %v5772_v47 }
 0x2f7   : > { %v3563_v6 = vpop.f32.mrf.mxu1 }
 0x2f9   : > { %v3564_v29 = vpop.f32.mrf.mxu1 }
 0x2fa   : > { %v3565_v57 = vadd.f32 %v3564_v29, %v3563_v6 }
 0x2fb   : > { %v3566_v40 = vpop.f32.mrf.mxu1 }
 0x2fc   : > { %v2327_v12 = vadd.f32 %v3565_v57, %v5728_v16  ;;  %v3632_v16 = vadd.f32 %v5795_v41, %v5793_v51  ;;  %v6285_v57 = vld [vmem:[#allocation42_spill] sm:$0xff] }
 0x2fd   : > { %v3567_v14 = vpop.f32.mrf.mxu1 }
 0x2ff   : > { %v5801_v25 = vpop.f32.mrf.mxu1 }
 0x301   : > { %v5805_v55 = vpop.f32.mrf.mxu1 }
 0x303   : > { %v5807_v11 = vpop.f32.mrf.mxu1 }
 0x305   : > { %v5811_v5 = vpop.f32.mrf.mxu1 }
 0x307   : > { %v3575_v2 = vpop.f32.mrf.mxu1 }
 0x309   : > { %v3576_v31 = vpop.f32.mrf.mxu1 }
 0x30a   : > { %v3577_v3 = vadd.f32 %v3576_v31, %v3575_v2 }
 0x30b   : > { %v5815_v60 = vpop.f32.mrf.mxu1 }
 0x30c   : > { %v2343_v2 = vadd.f32 %v3577_v3, %v5760_v35 }
 0x30d   : > { %v3579_v42 = vpop.f32.mrf.mxu1 }
 0x30e   : > { %v3580_v13 = vadd.f32 %v3579_v42, %v5815_v60  ;;  %v6284_v42 = vld [vmem:[#allocation37_spill] sm:$0xff] }
 0x30f   : > { %v5819_v8 = vpop.f32.mrf.mxu1 }
 0x310   : > { %6275 = vst [vmem:[#allocation46_spill] sm:$0xff] %v5819_v8  ;;  %v3550_v8 = vadd.f32 %v3549_v0, %v3548_v62 }
 0x311   : > { %v5823_v52 = vpop.f32.mrf.mxu1 }
 0x312   : > { %6277 = vst [vmem:[#allocation48_spill] sm:$0xff] %v5823_v52  ;;  %v5840_v52 = vpop.f32.mrf.mxu0  ;;  %v2306_v62 = vadd.f32 %v3550_v8, %v5706_v54 }
 0x313   : > { %v5825_v21 = vpop.f32.mrf.mxu1  ;;  %6282 = vst [vmem:[#allocation53_spill] sm:$0xff] %v5840_v52  ;;  %v3559_v52 = vadd.f32 %v3558_v58, %v3557_v1 }
 0x314   : > { %6278 = vst [vmem:[#allocation49_spill] sm:$0xff] %v5825_v21  ;;  %v5852_v0 = vpop.f32.mrf.mxu0  ;;  %v2403_v8 = vadd.f32 %v3614_v26, %v2306_v62 }
 0x315   : > { %v5829_v33 = vpop.f32.mrf.mxu1  ;;  %v2319_v9 = vadd.f32 %v3559_v52, %v5720_v20 }
 0x316   : > { %6279 = vst [vmem:[#allocation50_spill] sm:$0xff] %v5829_v33  ;;  %v3617_v33 = vadd.f32 %v5757_v50, %v5754_v18  ;;  %v3568_v50 = vadd.f32 %v3567_v14, %v3566_v40  ;;  %v3571_v40 = vadd.f32 %v5805_v55, %v5801_v25  ;;  %v3641_v25 = vadd.f32 %v5817_v27, %v5813_v30 }
 0x317   : > { %v5831_v63 = vpop.f32.mrf.mxu1  ;;  %v2416_v14 = vadd.f32 %v3623_v59, %v2319_v9  ;;  %v6293_v9 = vld [vmem:[#allocation45_spill] sm:$0xff] }
 0x318   : > { %6280 = vst [vmem:[#allocation51_spill] sm:$0xff] %v5831_v63  ;;  %v2314_v63 = vadd.f32 %v3556_v19, %v5716_v48  ;;  %v2408_v36 = vadd.f32 %v3617_v33, %v2311_v32  ;;  %v2400_v19 = vadd.f32 %v3611_v15, %v2303_v49  ;;  %v3629_v32 = vadd.f32 %v5791_v53, %v5789_v38 }
 0x319   : > { %v5835_v10 = vpop.f32.mrf.mxu1  ;;  %v2330_v1 = vadd.f32 %v3568_v50, %v5736_v45  ;;  %v3626_v45 = vadd.f32 %v5786_v7, %v5784_v46  ;;  %v3574_v33 = vadd.f32 %v5811_v5, %v5807_v11  ;;  %v2168_v7 = vadd.f32 %v5780_v39, %v5694_v23 }
 0x31a   : > { %v2411_v28 = vadd.f32 %v3620_v44, %v2314_v63  ;;  %v2424_v52 = vadd.f32 %v3629_v32, %v2327_v12  ;;  %v2335_v55 = vadd.f32 %v3571_v40, %v5744_v4  ;;  %v2346_v11 = vadd.f32 %v3580_v13, %v6284_v42  ;;  %v6292_v32 = vld [vmem:[#allocation44_spill] sm:$0xff]  ;;  %v6299_v40 = vld [vmem:[#allocation41_spill] sm:$0xff] }
 0x31b   : > { %v5837_v37 = vpop.f32.mrf.mxu1  ;;  %v2440_v39 = vadd.f32 %v3641_v25, %v2343_v2  ;;  %v6302_v25 = vld [vmem:[#allocation53_spill] sm:$0xff] }
 0x31d   : > { %v5842_v21 = vpop.f32.mrf.mxu1 }
 0x31e   : > { %6283 = vst [vmem:[#allocation54_spill] sm:$0xff] %v5842_v21  ;;  %v5856_v21 = vpop.f32.mrf.mxu0 }
 0x31f   : > { %v3779_v43 = vpop.f32.mrf.mxu1  ;;  %v6289_v27 = vld [vmem:[#allocation51_spill] sm:$0xff] }
 0x320   : > { %v2505_v48 = vadd.f32 %v3779_v43, %v2408_v36  ;;  %v3651_v29 = vpop.f32.mrf.mxu0  ;;  %v6286_v36 = vld [vmem:[#allocation43_spill] sm:$0xff]  ;;  %v3589_v4 = vadd.f32 %v5835_v10, %v6289_v27 }
 0x321   : > { %v2496_v18 = vpop.f32.mrf.mxu1  ;;  %v3635_v26 = vadd.f32 %v6286_v36, %v6285_v57 }
 0x322   : > { %v2497_v54 = vadd.f32 %v2496_v18, %v2400_v19  ;;  %v2561_v58 = vmax.f32 %v2505_v48, 0.0  ;;  %v3652_v15 = vpop.f32.mrf.mxu0  ;;  %v6287_v18 = vld [vmem:[#allocation47_spill] sm:$0xff]  ;;  %v6288_v48 = vld [vmem:[#allocation36_spill] sm:$0xff] }
 0x323   : > { %v3780_v61 = vpop.f32.mrf.mxu1  ;;  %v3644_v50 = vadd.f32 %v5827_v17, %v6287_v18  ;;  %v2338_v23 = vadd.f32 %v3574_v33, %v6288_v48 }
 0x324   : > { %v2508_v22 = vadd.f32 %v3780_v61, %v2411_v28  ;;  %v2322_v28 = vadd.f32 %v3562_v24, %v5724_v56  ;;  %v2559_v38 = vmax.f32 %v2497_v54, 0.0  ;;  %v2427_v56 = vadd.f32 %v3632_v16, %v2330_v1  ;;  %v3654_v30 = vpop.f32.mrf.mxu0  ;;  %v6290_v54 = vld [vmem:[#allocation35_spill] sm:$0xff]  ;;  %v6294_v1 = vld [vmem:[#allocation46_spill] sm:$0xff] }
 0x325   : > { %v2499_v34 = vpop.f32.mrf.mxu1  ;;  %v6296_v59 = vld [vmem:[#allocation54_spill] sm:$0xff]  ;;  %v2443_v10 = vadd.f32 %v3644_v50, %v2346_v11 }
 0x326   : > { %v2562_v49 = vmax.f32 %v2508_v22, 0.0  ;;  %v2500_v63 = vadd.f32 %v2499_v34, %v2403_v8  ;;  %v2419_v46 = vadd.f32 %v3626_v45, %v2322_v28  ;;  %v6291_v22 = vld [vmem:[#allocation38_spill] sm:$0xff]  ;;  %v3638_v34 = vadd.f32 %v6293_v9, %v6292_v32  ;;  %v3655_v45 = vpop.f32.mrf.mxu0  ;;  %v4122_v32 = vld [vmem:[%s4824_s1 + $0x8] sm:$0xff]  }
 0x327   : > { %v3783_v6 = vpop.f32.mrf.mxu1  ;;  %v3528_v8 = vadd.f32 %v6291_v22, %v6290_v54  ;;  %v3592_v16 = vadd.f32 %v6296_v59, %v5837_v37  ;;  %v5909_v54 = vld [vmem:[%s6304_s8] ss:$0 sm:$0xff]  ;;  %v2753_v9 = vunpack.c.l.bf16 %v4122_v32 }
 0x328   : > { %v2576_v53 = vpack.c.bf16 %v2562_v49, %v2561_v58  ;;  %v2560_v20 = vmax.f32 %v2500_v63, 0.0  ;;  %v2521_v41 = vadd.f32 %v3783_v6, %v2424_v52  ;;  %v6295_v58 = vld [vmem:[#allocation48_spill] sm:$0xff]  ;;  %v2432_v49 = vadd.f32 %v3635_v26, %v2335_v55  ;;  %v6297_v6 = vld [vmem:[#allocation49_spill] sm:$0xff] }
 0x329   : > { %v2512_v47 = vpop.f32.mrf.mxu1  ;;  %v3583_v17 = vadd.f32 %v6295_v58, %v6294_v1  ;;  %v3656_v55 = vadd.f32 %v3655_v45, %v3654_v30  ;;  %v4123_v1 = vld [vmem:[%s4824_s1] sm:$0xff]  }
 0x32a   : > { %v2575_v51 = vpack.c.bf16 %v2560_v20, %v2559_v38  ;;  %v2513_v43 = vadd.f32 %v2512_v47, %v2416_v14  ;;  %v2565_v5 = vmax.f32 %v2521_v41, 0.0  ;;  %v6298_v38 = vld [vmem:[#allocation50_spill] sm:$0xff]  ;;  %v2265_v20 = vadd.f32 %v3528_v8, %v2168_v7 }
 0x32b   : > { %v3784_v31 = vpop.f32.mrf.mxu1  ;;  %v2359_v14 = vadd.f32 %v3589_v4, %v6299_v40  ;;  %v3653_v41 = vadd.f32 %v3652_v15, %v3651_v29  ;;  %v3650_v29 = vadd.f32 %v5856_v21, %v5852_v0  ;;  %v2751_v58 = vunpack.c.l.bf16 %v4123_v1 }
 0x32c   : > { %v2524_v44 = vadd.f32 %v3784_v31, %v2427_v56  ;;  %3809 = vmatprep.mubr.bf16.mxu0 %v2575_v51  ;;  %v2563_v24 = vmax.f32 %v2513_v43, 0.0  ;;  %v2435_v51 = vadd.f32 %v3638_v34, %v2338_v23  ;;  %v6300_v56 = vld [vmem:[#allocation39_spill] sm:$0xff]  ;;  %v2362_v37 = vadd.f32 %v3592_v16, %v2265_v20  ;;  %v4124_v20 = vld [vmem:[%s4824_s1 + $0x18] sm:$0xff]  }
 0x32d   : > { %v2515_v60 = vpop.f32.mrf.mxu1  ;;  %3810 = vmatmul.mubr.bf16.vlgmr.msra.gmra.mxu0 %v2576_v53  ;;  %v3586_v53 = vadd.f32 %v6298_v38, %v6297_v6  ;;  %v2351_v33 = vadd.f32 %v3583_v17, %v6300_v56  ;;  %v2456_v57 = vadd.f32 %v3653_v41, %v2359_v14  ;;  %v2752_v59 = vunpack.c.h.bf16 %v4123_v1 }
 0x32e   : > { %v2566_v35 = vmax.f32 %v2524_v44, 0.0  ;;  %v2516_v62 = vadd.f32 %v2515_v60, %v2419_v46  ;;  %v6301_v46 = vld [vmem:[#allocation52_spill] sm:$0xff]  ;;  %v2459_v50 = vadd.f32 %v3656_v55, %v2362_v37  ;;  %v2758_v56 = vunpack.c.h.bf16 %v4124_v20 }
 0x32f   : > { %v3787_v19 = vpop.f32.mrf.mxu1  ;;  %v3647_v7 = vadd.f32 %v6302_v25, %v6301_v46  ;;  %v6303_v60 = vld [vmem:[#allocation40_spill] sm:$0xff] }
 0x330   : > { %v2578_v61 = vpack.c.bf16 %v2566_v35, %v2565_v5  ;;  %v2564_v12 = vmax.f32 %v2516_v62, 0.0  ;;  %v2537_v3 = vadd.f32 %v3787_v19, %v2440_v39  ;;  %v2354_v42 = vadd.f32 %v3586_v53, %v6303_v60 }
 0x331   : > { %v2528_v63 = vpop.f32.mrf.mxu1  ;;  %v2448_v18 = vadd.f32 %v3647_v7, %v2351_v33 }
 0x332   : > { %v2577_v28 = vpack.c.bf16 %v2564_v12, %v2563_v24  ;;  %v2529_v47 = vadd.f32 %v2528_v63, %v2432_v49  ;;  %v2569_v31 = vmax.f32 %v2537_v3, 0.0  ;;  %v2451_v19 = vadd.f32 %v3650_v29, %v2354_v42 }
 0x333   : > { %v3788_v52 = vpop.f32.mrf.mxu1  ;;  %v2754_v49 = vunpack.c.h.bf16 %v4122_v32 }
 0x334   : > { %v2540_v13 = vadd.f32 %v3788_v52, %v2443_v10  ;;  %3813 = vmatprep.mubr.bf16.mxu0 %v2577_v28  ;;  %v2567_v5 = vmax.f32 %v2529_v47, 0.0  ;;  %v2757_v52 = vunpack.c.l.bf16 %v4124_v20 }
 0x335   : > { %v2531_v2 = vpop.f32.mrf.mxu1  ;;  %3814 = vmatmul.mubr.bf16.gmra.mxu0 %v2578_v61 }
 0x336   : > { %v2570_v43 = vmax.f32 %v2540_v13, 0.0  ;;  %v2532_v44 = vadd.f32 %v2531_v2, %v2435_v51  ;;  %v4125_v51 = vld [vmem:[%s4824_s1 + $0x10] sm:$0xff]  }
 0x337   : > { %v3791_v11 = vpop.f32.mrf.mxu1  ;;  %v2755_v41 = vunpack.c.l.bf16 %v4125_v51  ;;  %v2756_v7 = vunpack.c.h.bf16 %v4125_v51 }
 0x338   : > { %v2580_v35 = vpack.c.bf16 %v2570_v43, %v2569_v31  ;;  %v2568_v62 = vmax.f32 %v2532_v44, 0.0  ;;  %v2553_v26 = vadd.f32 %v3791_v11, %v2456_v57 }
 0x339   : > { %v2544_v15 = vpop.f32.mrf.mxu1 }
 0x33a   : > { %v2579_v36 = vpack.c.bf16 %v2568_v62, %v2567_v5  ;;  %v2545_v23 = vadd.f32 %v2544_v15, %v2448_v18  ;;  %v2573_v27 = vmax.f32 %v2553_v26, 0.0  ;;  %v4127_v18 = vld [vmem:[%s4824_s1 + $0x20] sm:$0xff]  }
 0x33b   : > { %v3792_v48 = vpop.f32.mrf.mxu1 }
 0x33c   : > { %v2556_v39 = vadd.f32 %v3792_v48, %v2459_v50  ;;  %3817 = vmatprep.mubr.bf16.mxu1 %v2579_v36  ;;  %v2571_v61 = vmax.f32 %v2545_v23, 0.0  ;;  %v2759_v50 = vunpack.c.l.bf16 %v4127_v18 }
 0x33d   : > { %v2547_v30 = vpop.f32.mrf.mxu1  ;;  %3818 = vmatmul.mubr.bf16.vlgmr.msra.gmra.mxu1 %v2580_v35  ;;  %v4126_v35 = vld [vmem:[%s4824_s1 + $0x28] sm:$0xff]  }
 0x33e   : > { %v2574_v4 = vmax.f32 %v2556_v39, 0.0  ;;  %v2548_v24 = vadd.f32 %v2547_v30, %v2451_v19  ;;  %v2761_v62 = vunpack.c.l.bf16 %v4126_v35  ;;  %v2762_v48 = vunpack.c.h.bf16 %v4126_v35 }
 0x340   : > { %v2582_v12 = vpack.c.bf16 %v2574_v4, %v2573_v27  ;;  %v2572_v21 = vmax.f32 %v2548_v24, 0.0 }
 0x342   : > { %v2581_v0 = vpack.c.bf16 %v2572_v21, %v2571_v61 }
 0x344   : > { %3821 = vmatprep.mubr.bf16.mxu1 %v2581_v0 }
 0x345   : > { %3822 = vmatmul.mubr.bf16.gmra.mxu1 %v2582_v12  ;;  %v2760_v12 = vunpack.c.h.bf16 %v4127_v18 }
 0x3ed   : > { %v3811_v22 = vpop.f32.mrf.mxu0 }
 0x3ee   : > { %v2697_v8 = vadd.f32 %v3811_v22, %v5909_v54 }
 0x3ef   : > { %v2688_v34 = vpop.f32.mrf.mxu0 }
 0x3f0   : > { %v2689_v17 = vadd.f32 %v5909_v54, %v2688_v34  ;;  %v2769_v16 = vadd.f32 %v2753_v9, %v2697_v8  ;;  %v4128_v9 = vld [vmem:[%s4824_s1 + $0x38] sm:$0xff]  }
 0x3f1   : > { %v3812_v63 = vpop.f32.mrf.mxu0  ;;  %v2765_v34 = vunpack.c.l.bf16 %v4128_v9 }
 0x3f2   : > { %v2700_v28 = vadd.f32 %v3812_v63, %v5909_v54  ;;  %v2767_v10 = vadd.f32 %v2751_v58, %v2689_v17  ;;  %v2785_v45 = vmax.f32 %v2769_v16, 0.0 }
 0x3f3   : > { %v2691_v3 = vpop.f32.mrf.mxu0 }
 0x3f4   : > { %v2770_v6 = vadd.f32 %v2754_v49, %v2700_v28  ;;  %v2692_v38 = vadd.f32 %v5909_v54, %v2691_v3  ;;  %v2783_v33 = vmax.f32 %v2767_v10, 0.0  ;;  %v2766_v28 = vunpack.c.h.bf16 %v4128_v9 }
 0x3f5   : > { %v3815_v53 = vpop.f32.mrf.mxu0 }
 0x3f6   : > { %v2786_v40 = vmax.f32 %v2770_v6, 0.0  ;;  %v2768_v14 = vadd.f32 %v2752_v59, %v2692_v38  ;;  %v2713_v47 = vadd.f32 %v3815_v53, %v5909_v54  ;;  %v4129_v59 = vld [vmem:[%s4824_s1 + $0x30] sm:$0xff]   ;;  %s2892_s1 = sadd.s32 %s3293_s12, %s3292_s18 }
 0x3f7   : > { %v2704_v13 = vpop.f32.mrf.mxu0  ;;  %v2763_v16 = vunpack.c.l.bf16 %v4129_v59  ;;  %s3294_s9 = sshll.u32 %s2892_s1, 6 }
 0x3f8   : > { %v3328_v2 = vpack.c.bf16 %v2786_v40, %v2785_v45  ;;  %v2784_v37 = vmax.f32 %v2768_v14, 0.0  ;;  %v2705_v31 = vadd.f32 %v5909_v54, %v2704_v13  ;;  %v2773_v46 = vadd.f32 %v2757_v52, %v2713_v47  ;;  %s5954_s26 = scalar_lea.hbm %s6306_s23, %s3294_s9 }
 0x3f9   : > { %v3816_v43 = vpop.f32.mrf.mxu0  ;;  %v2764_v40 = vunpack.c.h.bf16 %v4129_v59 }
 0x3fa   : > { %3360 = vst [vmem:[%s5923_s27 + $0x8] sm:$0xff] %v3328_v2   ;;  %v3323_v44 = vpack.c.bf16 %v2784_v37, %v2783_v33  ;;  %v2716_v25 = vadd.f32 %v3816_v43, %v5909_v54  ;;  %v2771_v60 = vadd.f32 %v2755_v41, %v2705_v31  ;;  %v2789_v57 = vmax.f32 %v2773_v46, 0.0 }
 0x3fb   : > { %v2707_v55 = vpop.f32.mrf.mxu0 }
 0x3fc   : > { %3324 = vst [vmem:[%s5923_s27] sm:$0xff] %v3323_v44   ;;  %v2774_v42 = vadd.f32 %v2758_v56, %v2716_v25  ;;  %v2708_v11 = vadd.f32 %v5909_v54, %v2707_v55  ;;  %v2787_v23 = vmax.f32 %v2771_v60, 0.0 }
 0x3fd   : > { %v3819_v5 = vpop.f32.mrf.mxu1 }
 0x3fe   : > { %v2790_v29 = vmax.f32 %v2774_v42, 0.0  ;;  %v2772_v15 = vadd.f32 %v2756_v7, %v2708_v11  ;;  %v2729_v36 = vadd.f32 %v3819_v5, %v5909_v54 }
 0x3ff   : > { %v2720_v26 = vpop.f32.mrf.mxu1 }
 0x400   : > { %v3338_v39 = vpack.c.bf16 %v2790_v29, %v2789_v57  ;;  %v2788_v19 = vmax.f32 %v2772_v15, 0.0  ;;  %v2721_v30 = vadd.f32 %v5909_v54, %v2720_v26  ;;  %v2777_v24 = vadd.f32 %v2761_v62, %v2729_v36 }
 0x401   : > { %v3820_v27 = vpop.f32.mrf.mxu1 }
 0x402   : > { %3362 = vst [vmem:[%s5923_s27 + $0x18] sm:$0xff] %v3338_v39   ;;  %v3333_v4 = vpack.c.bf16 %v2788_v19, %v2787_v23  ;;  %v2732_v61 = vadd.f32 %v3820_v27, %v5909_v54  ;;  %v2775_v0 = vadd.f32 %v2759_v50, %v2721_v30  ;;  %v2793_v1 = vmax.f32 %v2777_v24, 0.0 }
 0x403   : > { %v2723_v21 = vpop.f32.mrf.mxu1 }
 0x404   : > { %3361 = vst [vmem:[%s5923_s27 + $0x10] sm:$0xff] %v3333_v4   ;;  %v2778_v22 = vadd.f32 %v2762_v48, %v2732_v61  ;;  %v2724_v8 = vadd.f32 %v5909_v54, %v2723_v21  ;;  %v2791_v3 = vmax.f32 %v2775_v0, 0.0 }
 0x405   : > { %v3823_v32 = vpop.f32.mrf.mxu1 }
 0x406   : > { %v2794_v58 = vmax.f32 %v2778_v22, 0.0  ;;  %v2776_v17 = vadd.f32 %v2760_v12, %v2724_v8  ;;  %v2745_v49 = vadd.f32 %v3823_v32, %v5909_v54 }
 0x407   : > { %v2736_v63 = vpop.f32.mrf.mxu1 }
 0x408   : > { %v3348_v10 = vpack.c.bf16 %v2794_v58, %v2793_v1  ;;  %v2792_v6 = vmax.f32 %v2776_v17, 0.0  ;;  %v2737_v38 = vadd.f32 %v5909_v54, %v2736_v63  ;;  %v2781_v52 = vadd.f32 %v2765_v34, %v2745_v49 }
 0x409   : > { %v3824_v53 = vpop.f32.mrf.mxu1 }
 0x40a   : > { %3364 = vst [vmem:[%s5923_s27 + $0x28] sm:$0xff] %v3348_v10   ;;  %v3343_v20 = vpack.c.bf16 %v2792_v6, %v2791_v3  ;;  %v2748_v45 = vadd.f32 %v3824_v53, %v5909_v54  ;;  %v2779_v47 = vadd.f32 %v2763_v16, %v2737_v38  ;;  %v2797_v41 = vmax.f32 %v2781_v52, 0.0 }
 0x40b   : > { %v2739_v14 = vpop.f32.mrf.mxu1 }
 0x40c   : > { %3363 = vst [vmem:[%s5923_s27 + $0x20] sm:$0xff] %v3343_v20   ;;  %v2782_v13 = vadd.f32 %v2766_v28, %v2748_v45  ;;  %v2740_v51 = vadd.f32 %v5909_v54, %v2739_v14  ;;  %v2795_v2 = vmax.f32 %v2779_v47, 0.0 }
 0x40e   : > { %v2798_v56 = vmax.f32 %v2782_v13, 0.0  ;;  %v2780_v33 = vadd.f32 %v2764_v40, %v2740_v51 }
 0x410   : > { %v3358_v37 = vpack.c.bf16 %v2798_v56, %v2797_v41  ;;  %v2796_v31 = vmax.f32 %v2780_v33, 0.0 }
 0x412   : > { %3366 = vst [vmem:[%s5923_s27 + $0x38] sm:$0xff] %v3358_v37   ;;  %v3353_v43 = vpack.c.bf16 %v2796_v31, %v2795_v2 }
 0x414   : > { %3365 = vst [vmem:[%s5923_s27 + $0x30] sm:$0xff] %v3353_v43  }
 0x415   : > { %4305 = shalt.err (!%p4302_p4)
}
 0x416   : > { %s4306_s25 = scalar_lea.hbm %s5954_s26, 1024  ;;  %s4310_s19 = scalar_lea.hbm %s6306_s23, 4096 }
 0x417   : > { %p4307_p10 = scmp.ne.s32.totalorder %s5954_s26, %s4306_s25  ;;  %p4311_p3 = scmp.lt.s32.totalorder %s5954_s26, %s6306_s23 }
 0x418   : > { %p4312_p2 = scmp.lt.s32.totalorder %s4310_s19, %s4306_s25 }
 0x419   : > { %p4308_p5 = pnand %p4307_p10, %p6307_p1 }
 0x41a   : > { %p4313_p9 = por %p4312_p2, %p4311_p3 }
 0x41b   : > { %p4309_p8 = pneg %p4308_p5 }
 0x41d   : > { %p4314_p13 = pnand %p4313_p9, %p4309_p8 }
 0x41f   : > { %4317 = shalt.err (!%p4314_p13)
}
 0x420   : > { %s4467_s21 = smov 64   ;;  %s4468_s18 = smov 4  }
 0x421   : > { %3859 = dma.vmem_to_hbm [thread:$0]  (%p6307_p1), %s5948_s2, 1024, %s5954_s26, %s2880_s28, %s4467_s21, %s4467_s21, %s4468_s18  }
 0x422 PF: > { %p3892_p6 = scmp.ge.s32.totalorder %s4452_s22, 2  ;;  %s2910_s12 = sand.u32 1, %s4424_s15  }
 0x423   : > { %p6308_p12 = scmp.ne.s32.totalorder %s6132_s29, 0  ;;  %s2911_s1 = scalar_lea.sflag [#allocation4], %s2910_s12 }
 0x425   : > { %p3882_p7 = pnand %p3892_p6, %p6308_p12 }
 0x427   : > { %p3883_p11 = pneg %p3882_p7 }
 0x429   : > { %4395 = dma.done.wait (%p3883_p11), %s2911_s1, 1024  }
 0x42a   : > { %4397 = vsyncadd (%p3883_p11), %s2911_s1, 4294966272  ;;  %s30_s22 = sadd.s32 1, %s4452_s22   ;;  %s6310_s11 = sld [smem:[#allocation21_spill]] }
 0x42b   : > { %p5985_p0 = scmp.ge.s32.totalorder %s30_s22, 6   ;;  %s6311_s10 = sld [smem:[#allocation22_spill]] }
 0x42c   : > { %s6312_s12 = sld [smem:[#allocation23_spill]]  ;;  %s6314_s29 = smov %s4730_s30 }
 0x42d   : > { %s6313_s20 = sld [smem:[#allocation34_spill]]  ;;  %s6321_s13 = smov %s4420_s14 }
 0x42e   : > { %s6315_s18 = sld [smem:[#allocation26_spill]]  ;;  %s6323_s15 = smov %s4428_s16 }
 0x42f   : > { %s6316_s19 = sld [smem:[#allocation27_spill]]  ;;  %s6324_s16 = smov %s4432_s17 }
 0x430   : > { %s6317_s2 = sld [smem:[#allocation29_spill]]  ;;  %s6319_s30 = smov %s6310_s11 }
 0x431   : > { %s6318_s21 = sld [smem:[#allocation30_spill]]  ;;  %s6320_s11 = smov %s6342_s3 }
 0x432   : > { %s6325_s17 = smov %s6314_s29  ;;  %29 = sbr.rel (!%p5985_p0) target bundleno = 25 (0x19), region = 137 }
 0x433   : > { %s6322_s14 = smov %s6313_s20 }
 0x436   : > { %s6326_s20 = smov %s6317_s2 }
 0x437   :  { %2916 = vsyncpa [#allocation3], 1 }
 0x438   :  { %2918 = vsyncpa [#allocation3 + $0x1], 1 }
 0x439   :  { %2919 = vsyncpa [#allocation6], 1 }
 0x43a   :  { %2921 = vsyncpa [#allocation6 + $0x1], 1 }
 0x43b   :  { %2922 = vsyncpa [#allocation9], 1 }
 0x43c   :  { %2923 = vsyncpa [#allocation12], 1 }
 0x43d   :  { %2924 = vsyncpa [#allocation4], 1 }
 0x43e   :  { %2926 = vsyncpa [#allocation4 + $0x1], 1 }

</bundles_post_ra>
